<compile_context>
chip_gen: v6e
topology: v6e:2x2x1
jax: 0.10.0
libtpu: 0.0.40
codegen_flags: <defaults>
</compile_context>

<pallas_src>
import functools

import jax
import jax.numpy as jnp
from jax import lax
from jax.experimental import pallas as pl
from jax.experimental.pallas import tpu as pltpu


_NEG_INF = -1e30


def _cross_attention_kernel(h_ref, xs_ref, ys_ref, o_ref, *, inv_temp, m_valid):
    # h_ref: (Bt, C, Nt)   xs_ref / ys_ref: (Bt, C, Mp)   o_ref: (Bt, C, Nt)
    h = h_ref[...].astype(jnp.float32) * inv_temp   # fold 1/temp into the small operand
    xs = xs_ref[...].astype(jnp.float32)
    ys = ys_ref[...].astype(jnp.float32)

    # logits[b, n, m] = sum_c h[b, c, n] * xs[b, c, m]  (contract C, batch over B)
    att = lax.dot_general(
        h, xs, (((1,), (1,)), ((0,), (0,))),
        preferred_element_type=jnp.float32)          # (Bt, Nt, Mp)

    # Mask padded M columns so they don't pollute the softmax denominator.
    if m_valid < att.shape[-1]:
        col = lax.broadcasted_iota(jnp.int32, att.shape, dimension=2)
        att = jnp.where(col < m_valid, att, _NEG_INF)

    # Numerically-stable softmax over the last axis (dim=2 in the PyTorch code).
    att_max = jnp.max(att, axis=-1, keepdims=True)
    p = jnp.exp(att - att_max)
    denom = jnp.sum(p, axis=-1, keepdims=True)
    att = p * pl.reciprocal(denom, approx=True)

    # out[b, c, n] = sum_m ys[b, c, m] * att[b, n, m]
    out = lax.dot_general(
        ys, att, (((2,), (2,)), ((0,), (0,))),
        preferred_element_type=jnp.float32)          # (Bt, C, Nt)
    o_ref[...] = out.astype(o_ref.dtype)


def _round_up(x, m):
    return ((x + m - 1) // m) * m


def _choose_tiles(B, C, n_pad, m_pad, budget_bytes=16 * 1024 * 1024):
    """Pick (batch tile, N tile) so the per-step working set stays well under
    the default scoped-VMEM limit (safe on v5e/v6e's 128 MiB and v7x's 64 MiB)."""
    # N tile: largest multiple of 128 that divides n_pad, capped at 2048 lanes.
    nt = 128
    for cand in range(min(n_pad, 2048), 127, -128):
        if n_pad % cand == 0:
            nt = cand
            break

    def vmem_bytes(bt, nt_):
        io = 2 * bt * C * (2 * nt_ + 2 * m_pad)      # double-buffered h/out + xs/ys
        inter = 2 * bt * nt_ * m_pad                 # logits + exp intermediates
        return 4 * (io + inter)

    bt = 1
    for cand in range(min(B, 8), 0, -1):
        if B % cand == 0 and vmem_bytes(cand, nt) <= budget_bytes:
            bt = cand
            break
    return bt, nt


def cross_attention(h, xs, ys, temp: float = 1.0):
    """h: (B, C, H, W), xs/ys: (B, C, Hs, Ws) -> (B, C, H, W)."""
    B, C, H, W = h.shape
    Bs, Cs, Hs, Ws = xs.shape
    assert B == Bs and C == Cs
    assert ys.shape == xs.shape
    N = H * W
    M = Hs * Ws
    n_pad = _round_up(N, 128)
    m_pad = _round_up(M, 128)

    h_f = h.reshape(B, C, N)
    xs_f = xs.reshape(B, C, M)
    ys_f = ys.reshape(B, C, M)

    # Pad the lane dims to multiples of 128 for lane-dense loads/stores.
    if n_pad != N:
        h_f = jnp.pad(h_f, ((0, 0), (0, 0), (0, n_pad - N)))
    if m_pad != M:
        pad = ((0, 0), (0, 0), (0, m_pad - M))
        xs_f = jnp.pad(xs_f, pad)
        ys_f = jnp.pad(ys_f, pad)

    bt, nt = _choose_tiles(B, C, n_pad, m_pad)
    grid = (B // bt, n_pad // nt)

    kernel = functools.partial(
        _cross_attention_kernel, inv_temp=1.0 / float(temp), m_valid=M)

    out_f = pl.pallas_call(
        kernel,
        out_shape=jax.ShapeDtypeStruct((B, C, n_pad), h.dtype),
        grid_spec=pltpu.PrefetchScalarGridSpec(
            num_scalar_prefetch=0,
            grid=grid,
            in_specs=[
                pl.BlockSpec((bt, C, nt), lambda b, n: (b, 0, n)),
                pl.BlockSpec((bt, C, m_pad), lambda b, n: (b, 0, 0)),  # resident over N tiles
                pl.BlockSpec((bt, C, m_pad), lambda b, n: (b, 0, 0)),  # resident over N tiles
            ],
            out_specs=pl.BlockSpec((bt, C, nt), lambda b, n: (b, 0, n)),
        ),
        compiler_params=pltpu.CompilerParams(
            dimension_semantics=("parallel", "parallel")),
    )(h_f, xs_f, ys_f)

    if n_pad != N:
        out_f = out_f[:, :, :N]
    return out_f.reshape(B, C, H, W)


def _reference(h, xs, ys, temp=1.0):
    B, C, H, W = h.shape
    Bs, Cs, Hs, Ws = xs.shape
    h_f = h.reshape(B, C, H * W)
    xs_f = xs.reshape(Bs, Cs, Hs * Ws)
    ys_f = ys.reshape(ys.shape[0], ys.shape[1], -1)
    att = jnp.einsum("bcn,bcm->bnm", h_f, xs_f) / temp
    att = jax.nn.softmax(att, axis=2)
    out = jnp.einsum("bcm,bnm->bcn", ys_f, att)
    return out.reshape(B, C, H, W)


if __name__ == "__main__":
    key = jax.random.PRNGKey(0)
    k1, k2, k3 = jax.random.split(key, 3)

    B, C, H, W = 2, 4, 16, 16      # h spatial -> N = 256
    Hs, Ws = 8, 8                  # xs / ys spatial -> M = 64 (padded to 128)
    temp = 1.0

    h = jax.random.normal(k1, (B, C, H, W), dtype=jnp.float32)
    xs = jax.random.normal(k2, (B, C, Hs, Ws), dtype=jnp.float32)
    ys = jax.random.normal(k3, (B, C, Hs, Ws), dtype=jnp.float32)

    out = cross_attention(h, xs, ys, temp=temp)
    out = jax.block_until_ready(out)

    ref = _reference(h, xs, ys, temp=temp)
    assert out.shape == (B, C, H, W)
    # Slightly relaxed tolerance to accommodate the EUP approx reciprocal.
    assert jnp.allclose(out, ref, atol=1e-3, rtol=1e-3), (
        float(jnp.max(jnp.abs(out - ref))))

    print("KERNEL_OK")
</pallas_src>

<mosaic_0001>
module attributes {stable_mosaic.version = 11 : i64} {
  func.func @_cross_attention_kernel(%arg0: i32, %arg1: i32, %arg2: memref<2x4x256xf32, #tpu.memory_space<vmem>>, %arg3: memref<2x4x128xf32, #tpu.memory_space<vmem>>, %arg4: memref<2x4x128xf32, #tpu.memory_space<vmem>>, %arg5: memref<2x4x256xf32, #tpu.memory_space<vmem>>) attributes {dimension_semantics = [#tpu.dimension_semantics<parallel>, #tpu.dimension_semantics<parallel>], iteration_bounds = array<i64: 1, 1>, scalar_prefetch = 0 : i64, scratch_operands = 0 : i64, tpu.core_type = #tpu.core_type<tc>, window_params = [{transform_indices = @transform_0, window_bounds = array<i64: 2, 4, 256>}, {transform_indices = @transform_1, window_bounds = array<i64: 2, 4, 128>}, {transform_indices = @transform_2, window_bounds = array<i64: 2, 4, 128>}, {transform_indices = @transform_3, window_bounds = array<i64: 2, 4, 256>}]} {
    %c0 = arith.constant 0 : index
    %c0_0 = arith.constant 0 : index
    %c0_1 = arith.constant 0 : index
    %0 = vector.load %arg2[%c0, %c0_0, %c0_1] : memref<2x4x256xf32, #tpu.memory_space<vmem>>, vector<2x4x256xf32>
    %cst = arith.constant 1.000000e+00 : f32
    %1 = vector.broadcast %cst : f32 to vector<2x4x256xf32>
    %2 = arith.mulf %0, %1 : vector<2x4x256xf32>
    %c0_2 = arith.constant 0 : index
    %c0_3 = arith.constant 0 : index
    %c0_4 = arith.constant 0 : index
    %3 = vector.load %arg3[%c0_2, %c0_3, %c0_4] : memref<2x4x128xf32, #tpu.memory_space<vmem>>, vector<2x4x128xf32>
    %c0_5 = arith.constant 0 : index
    %c0_6 = arith.constant 0 : index
    %c0_7 = arith.constant 0 : index
    %4 = vector.load %arg4[%c0_5, %c0_6, %c0_7] : memref<2x4x128xf32, #tpu.memory_space<vmem>>, vector<2x4x128xf32>
    %cst_8 = arith.constant dense<0.000000e+00> : vector<2x256x128xf32>
    %5 = tpu.matmul %2, %3, %cst_8 {dimension_numbers = #tpu.dot_dimension_numbers<[1], [1], [2], [2], [0, 0, 0, 2, 1, 2], [0], [0]>} : vector<2x4x256xf32>, vector<2x4x128xf32>, vector<2x256x128xf32> -> vector<2x256x128xf32>
    %6 = tpu.iota {dimensions = array<i32: 2>} : vector<2x256x128xi32>
    %c64_i32 = arith.constant 64 : i32
    %7 = vector.broadcast %c64_i32 : i32 to vector<2x256x128xi32>
    %8 = arith.cmpi slt, %6, %7 : vector<2x256x128xi32>
    %cst_9 = arith.constant -1.000000e+30 : f32
    %9 = vector.broadcast %cst_9 : f32 to vector<2x256x128xf32>
    %10 = arith.select %8, %5, %9 : vector<2x256x128xi1>, vector<2x256x128xf32>
    %cst_10 = arith.constant dense<0xFF800000> : vector<2x256xf32>
    %11 = vector.multi_reduction <maximumf>, %10, %cst_10 [2] : vector<2x256x128xf32> to vector<2x256xf32>
    %12 = vector.shape_cast %11 : vector<2x256xf32> to vector<2x256x1xf32>
    %13 = vector.broadcast %12 : vector<2x256x1xf32> to vector<2x256x128xf32>
    %14 = arith.subf %10, %13 : vector<2x256x128xf32>
    %15 = math.exp %14 : vector<2x256x128xf32>
    %cst_11 = arith.constant dense<0.000000e+00> : vector<2x256xf32>
    %16 = vector.multi_reduction <add>, %15, %cst_11 [2] : vector<2x256x128xf32> to vector<2x256xf32>
    %17 = vector.shape_cast %16 : vector<2x256xf32> to vector<2x256x1xf32>
    %18 = tpu.reciprocal %17 {approx = true} : vector<2x256x1xf32> -> vector<2x256x1xf32>
    %19 = vector.broadcast %18 : vector<2x256x1xf32> to vector<2x256x128xf32>
    %20 = arith.mulf %15, %19 : vector<2x256x128xf32>
    %cst_12 = arith.constant dense<0.000000e+00> : vector<2x4x256xf32>
    %21 = tpu.matmul %4, %20, %cst_12 {dimension_numbers = #tpu.dot_dimension_numbers<[2], [2], [1], [1], [0, 0, 0, 1, 1, 1], [0], [0]>} : vector<2x4x128xf32>, vector<2x256x128xf32>, vector<2x4x256xf32> -> vector<2x4x256xf32>
    %c0_13 = arith.constant 0 : index
    %c0_14 = arith.constant 0 : index
    %c0_15 = arith.constant 0 : index
    %22 = vector.load %arg5[%c0_13, %c0_14, %c0_15] : memref<2x4x256xf32, #tpu.memory_space<vmem>>, vector<2x4x256xf32>
    tpu.vector_store %arg5[%c0_13, %c0_14, %c0_15], %21 {strides = array<i32>} : memref<2x4x256xf32, #tpu.memory_space<vmem>>, vector<2x4x256xf32>,
    return
  }
  func.func @transform_0(%arg0: i32, %arg1: i32) -> (i32, i32, i32) {
    %c0_i32 = arith.constant 0 : i32
    %c0_i32_0 = arith.constant 0 : i32
    return %arg0, %c0_i32, %arg1 : i32, i32, i32
  }
  func.func @transform_1(%arg0: i32, %arg1: i32) -> (i32, i32, i32) {
    %c0_i32 = arith.constant 0 : i32
    %c0_i32_0 = arith.constant 0 : i32
    %c0_i32_1 = arith.constant 0 : i32
    return %arg0, %c0_i32, %c0_i32_0 : i32, i32, i32
  }
  func.func @transform_2(%arg0: i32, %arg1: i32) -> (i32, i32, i32) {
    %c0_i32 = arith.constant 0 : i32
    %c0_i32_0 = arith.constant 0 : i32
    %c0_i32_1 = arith.constant 0 : i32
    return %arg0, %c0_i32, %c0_i32_0 : i32, i32, i32
  }
  func.func @transform_3(%arg0: i32, %arg1: i32) -> (i32, i32, i32) {
    %c0_i32 = arith.constant 0 : i32
    %c0_i32_0 = arith.constant 0 : i32
    return %arg0, %c0_i32, %arg1 : i32, i32, i32
  }
}

</mosaic_0001>

<bundles_post_ra>
// kernel: tpu_custom_call.1
= control target key start
LH: loop header
LB: loop body
LE: loop exit
PB: predicated region body
PF: predicated region fallthrough
CT: control target
= control target key end

     0   :  { %8 = vsyncpa [#allocation3], 0  ;;  %s3223_s0 = inlined_call_operand.hbm [shape: f32[2,4,256], index: 0, kind: input, shape index: {}]   ;;  %s3224_s1 = inlined_call_operand.hbm [shape: f32[2,4,128], index: 1, kind: input, shape index: {}]   ;;  %s3225_s2 = inlined_call_operand.hbm [shape: f32[2,4,128], index: 2, kind: input, shape index: {}]   ;;  %s3226_s3 = inlined_call_operand.hbm [shape: f32[2,4,256], index: 3, kind: output, shape index: {}]  }
   0x1   :  { %9 = vsyncpa [#allocation6], 0 }
   0x2   :  { %10 = vsyncpa [#allocation4], 0  ;;  %s2312_s12 = smov [#allocation5]  }
   0x3   :  { %s28_s13 = sshll.u32 %s2312_s12, 4  ;;  %s29_s13 = int_to_ptr.vmem [resolvable:$true] %s28_s13 }
   0x4   :  { %s2234_s14 = scalar_lea.vmem %s29_s13, 128  ;;  %p2239_p1 = scmp.lt.s32.totalorder %s29_s13, %s29_s13 }
   0x5   :  { %p2235_p0 = scmp.ne.s32.totalorder %s29_s13, %s2234_s14  ;;  %p2240_p2 = scmp.lt.s32.totalorder %s2234_s14, %s2234_s14 }
   0x7   :  { %p2241_p3 = por %p2240_p2, %p2239_p1 }
   0x9   :  { %p2242_p4 = pnand %p2241_p3, %p2235_p0 }
   0xb   :  { %2245 = shalt.err (!%p2242_p4)
}
   0xc   :  { %s2313_s15 = smov 64   ;;  %s2314_s16 = smov 4  }
   0xd   :  { %34 = dma.hbm_to_vmem [thread:$0]  %s3224_s1, 128, %s29_s13, [#allocation6], %s2313_s15, %s2313_s15, %s2314_s16  }
   0xe   :  { %s2315_s19 = smov [#allocation2]  }
   0xf   :  { %s16_s20 = sshll.u32 %s2315_s19, 4  ;;  %s17_s20 = int_to_ptr.vmem [resolvable:$true] %s16_s20 }
  0x10   :  { %s2254_s21 = scalar_lea.vmem %s17_s20, 256  ;;  %p2259_p6 = scmp.lt.s32.totalorder %s17_s20, %s17_s20 }
  0x11   :  { %p2255_p5 = scmp.ne.s32.totalorder %s17_s20, %s2254_s21  ;;  %p2260_p7 = scmp.lt.s32.totalorder %s2254_s21, %s2254_s21 }
  0x13   :  { %p2261_p8 = por %p2260_p7, %p2259_p6 }
  0x15   :  { %p2262_p9 = pnand %p2261_p8, %p2255_p5 }
  0x17   :  { %2265 = shalt.err (!%p2262_p9)
}
  0x18   :  { %s2316_s22 = smov 128   ;;  %s2317_s23 = smov 8  }
  0x19   :  { %22 = dma.hbm_to_vmem [thread:$0]  %s3223_s0, 256, %s17_s20, [#allocation3], %s2316_s22, %s2316_s22, %s2317_s23  }
  0x1a   :  { %s2318_s1 = smov [#allocation7]  }
  0x1b   :  { %s40_s26 = sshll.u32 %s2318_s1, 4  ;;  %s41_s26 = int_to_ptr.vmem [resolvable:$true] %s40_s26 }
  0x1c   :  { %s2274_s27 = scalar_lea.vmem %s41_s26, 128  ;;  %p2279_p11 = scmp.lt.s32.totalorder %s41_s26, %s41_s26 }
  0x1d   :  { %p2275_p10 = scmp.ne.s32.totalorder %s41_s26, %s2274_s27  ;;  %p2280_p12 = scmp.lt.s32.totalorder %s2274_s27, %s2274_s27 }
  0x1f   :  { %p2281_p13 = por %p2280_p12, %p2279_p11 }
  0x21   :  { %p2282_p0 = pnand %p2281_p13, %p2275_p10 }
  0x23   :  { %2285 = shalt.err (!%p2282_p0)
}
  0x24   :  { %46 = dma.hbm_to_vmem [thread:$0]  %s3225_s2, 128, %s41_s26, [#allocation6], %s2313_s15, %s2313_s15, %s2314_s16  }
  0x25   :  { %2306 = dma.done.wait [#allocation3], 256  }
  0x26   :  { %2307 = vsyncadd [#allocation3], 4294967040 }
  0x27   :  { %2308 = dma.done.wait [#allocation6], 256  }
  0x28   :  { %2309 = vsyncadd [#allocation6], 4294967040  ;;  %vm226_vm0 = vcmask 1043456   ;;  %v56_v0 = vld [vmem:[#allocation2] sm:$0xff]  ;;  %v58_v1 = vld [vmem:[#allocation5] sm:$0xf] }
  0x29   :  { %65 = vxpose.xlu0.b32.start.end [1/1] (short) %v56_v0, 128  ;;  %v63_v2 = vcombine.high %v56_v0, %v56_v0  ;;  %1859 = vmatprep.subr.msk.mxu0 %vm226_vm0, %v58_v1  ;;  %v57_v3 = vld [vmem:[#allocation2 + $0x8] sm:$0xff]  ;;  %v59_v5 = vld [vmem:[#allocation5 + $0x4] sm:$0xf]  ;;  %vm129_vm1 = vcmask 31744   ;;  %s2319_s0 = smov [#allocation8]  }
  0x2a   :  { %1860 = vmatpush3.msk.msra.mxu0 %vm226_vm0, %v58_v1  ;;  %v456_v4 = vcombine.high %v57_v3, %v57_v3  ;;  %1909 = vmatprep.subr.msk.mxu1 %vm226_vm0, %v59_v5  ;;  %s1646_s2 = sshll.u32 %s2319_s0, 4  ;;  %s1647_s2 = int_to_ptr.vmem [resolvable:$true] %s1646_s2 }
  0x2b   :  { %97 = vxpose.xlu1.b32.start.end [1/1] (short) %v63_v2, 128  ;;  %1910 = vmatpush3.msk.msra.mxu1 %vm226_vm0, %v59_v5  ;;  %s2286_s30 = scalar_lea.vmem %s1647_s2, 256  ;;  %p2291_p2 = scmp.lt.s32.totalorder %s1647_s2, %s1647_s2 }
  0x2c   :  { %p2287_p1 = scmp.ne.s32.totalorder %s1647_s2, %s2286_s30  ;;  %p2292_p3 = scmp.lt.s32.totalorder %s2286_s30, %s2286_s30 }
  0x2e   :  { %p2293_p4 = por %p2292_p3, %p2291_p2 }
  0x30   :  { %p2294_p5 = pnand %p2293_p4, %p2287_p1 }
  0x66   :  { %458 = vxpose.xlu0.b32.start.end [1/1] (short) %v57_v3, 128 }
  0x68   :  { %490 = vxpose.xlu1.b32.start.end [1/1] (short) %v456_v4, 128 }
  0xa5   :  { %v81_v6 = vpop.trf.xlu0 }
  0xa6   :  { %1861 = vmatprep.mubr.msk.f32.mxu0 %vm129_vm1, %v81_v6  ;;  %v846_v6 = vlaneseq }
  0xa7   :  { %v113_v7 = vpop.trf.xlu1 }
  0xa9   :  { %v82_v8 = vpop.trf.xlu0 }
  0xaa   :  { %1862 = vmatmul.mubr.msk.f32.vlgmr.msra.gmra.mxu0 %vm129_vm1, %v82_v8  ;;  %v2418_v8 = vand.u32 127, %v846_v6 }
  0xab   :  { %v114_v9 = vpop.trf.xlu1 }
  0xac   :  { %vm848_vm2 = vcmp.lt.s32.totalorder %v2418_v8, 64 }
  0xad   :  { %v83_v10 = vpop.trf.xlu0 }
  0xae   :  { %1864 = vmatprep.mubr.msk.f32.mxu0 %vm129_vm1, %v83_v10 }
  0xaf   :  { %v115_v11 = vpop.trf.xlu1 }
  0xb1   :  { %v84_v12 = vpop.trf.xlu0 }
  0xb2   :  { %1865 = vmatmul.mubr.msk.f32.gmra.mxu0 %vm129_vm1, %v84_v12 }
  0xb3   :  { %v116_v13 = vpop.trf.xlu1 }
  0xb5   :  { %v85_v14 = vpop.trf.xlu0 }
  0xb6   :  { %1867 = vmatprep.mubr.msk.f32.mxu0 %vm129_vm1, %v85_v14 }
  0xb7   :  { %v117_v15 = vpop.trf.xlu1 }
  0xb9   :  { %v86_v16 = vpop.trf.xlu0 }
  0xba   :  { %1868 = vmatmul.mubr.msk.f32.gmra.mxu0 %vm129_vm1, %v86_v16 }
  0xbb   :  { %v118_v17 = vpop.trf.xlu1 }
  0xbd   :  { %v87_v18 = vpop.trf.xlu0 }
  0xbe   :  { %1870 = vmatprep.mubr.msk.f32.mxu0 %vm129_vm1, %v87_v18 }
  0xbf   :  { %v119_v19 = vpop.trf.xlu1 }
  0xc1   :  { %v88_v20 = vpop.trf.xlu0 }
  0xc2   :  { %1871 = vmatmul.mubr.msk.f32.gmra.mxu0 %vm129_vm1, %v88_v20 }
  0xc3   :  { %v120_v21 = vpop.trf.xlu1 }
  0xc5   :  { %v89_v22 = vpop.trf.xlu0 }
  0xc6   :  { %1873 = vmatprep.mubr.msk.f32.mxu0 %vm129_vm1, %v89_v22 }
  0xc7   :  { %v121_v23 = vpop.trf.xlu1 }
  0xc9   :  { %v90_v24 = vpop.trf.xlu0 }
  0xca   :  { %1874 = vmatmul.mubr.msk.f32.gmra.mxu0 %vm129_vm1, %v90_v24 }
  0xcb   :  { %v122_v25 = vpop.trf.xlu1 }
  0xcd   :  { %v91_v26 = vpop.trf.xlu0 }
  0xce   :  { %1876 = vmatprep.mubr.msk.f32.mxu0 %vm129_vm1, %v91_v26 }
  0xcf   :  { %v123_v27 = vpop.trf.xlu1 }
  0xd1   :  { %v92_v28 = vpop.trf.xlu0 }
  0xd2   :  { %1877 = vmatmul.mubr.msk.f32.gmra.mxu0 %vm129_vm1, %v92_v28 }
  0xd3   :  { %v124_v29 = vpop.trf.xlu1 }
  0xd5   :  { %v93_v30 = vpop.trf.xlu0 }
  0xd6   :  { %1879 = vmatprep.mubr.msk.f32.mxu0 %vm129_vm1, %v93_v30 }
  0xd7   :  { %v125_v31 = vpop.trf.xlu1 }
  0xd9   :  { %v94_v32 = vpop.trf.xlu0 }
  0xda   :  { %1880 = vmatmul.mubr.msk.f32.gmra.mxu0 %vm129_vm1, %v94_v32 }
  0xdb   :  { %v126_v33 = vpop.trf.xlu1 }
  0xdd   :  { %v95_v34 = vpop.trf.xlu0 }
  0xde   :  { %1882 = vmatprep.mubr.msk.f32.mxu0 %vm129_vm1, %v95_v34 }
  0xdf   :  { %v127_v35 = vpop.trf.xlu1 }
  0xe1   :  { %v96_v36 = vpop.trf.xlu0 }
  0xe2   :  { %1883 = vmatmul.mubr.msk.f32.gmra.mxu0 %vm129_vm1, %v96_v36 }
  0xe3   :  { %1885 = vmatprep.mubr.msk.f32.mxu0 %vm129_vm1, %v113_v7  ;;  %v128_v37 = vpop.trf.xlu1 }
  0xe5   :  { %v474_v38 = vpop.trf.xlu0 }
  0xe6   :  { %1886 = vmatmul.mubr.msk.f32.gmra.mxu0 %vm129_vm1, %v114_v9  ;;  %1911 = vmatprep.mubr.msk.f32.mxu1 %vm129_vm1, %v474_v38 }
  0xe7   :  { %1888 = vmatprep.mubr.msk.f32.mxu0 %vm129_vm1, %v115_v11  ;;  %v506_v39 = vpop.trf.xlu1 }
  0xe9   :  { %v475_v40 = vpop.trf.xlu0 }
  0xea   :  { %1889 = vmatmul.mubr.msk.f32.gmra.mxu0 %vm129_vm1, %v116_v13  ;;  %1912 = vmatmul.mubr.msk.f32.vlgmr.msra.gmra.mxu1 %vm129_vm1, %v475_v40 }
  0xeb   :  { %1891 = vmatprep.mubr.msk.f32.mxu0 %vm129_vm1, %v117_v15  ;;  %v507_v41 = vpop.trf.xlu1 }
  0xed   :  { %v476_v42 = vpop.trf.xlu0 }
  0xee   :  { %1914 = vmatprep.mubr.msk.f32.mxu1 %vm129_vm1, %v476_v42  ;;  %1892 = vmatmul.mubr.msk.f32.gmra.mxu0 %vm129_vm1, %v118_v17 }
  0xef   :  { %1894 = vmatprep.mubr.msk.f32.mxu0 %vm129_vm1, %v119_v19  ;;  %v508_v44 = vpop.trf.xlu1 }
  0xf1   :  { %v477_v43 = vpop.trf.xlu0 }
  0xf2   :  { %1915 = vmatmul.mubr.msk.f32.gmra.mxu1 %vm129_vm1, %v477_v43  ;;  %1895 = vmatmul.mubr.msk.f32.gmra.mxu0 %vm129_vm1, %v120_v21 }
  0xf3   :  { %1897 = vmatprep.mubr.msk.f32.mxu0 %vm129_vm1, %v121_v23  ;;  %v509_v46 = vpop.trf.xlu1 }
  0xf5   :  { %v478_v45 = vpop.trf.xlu0 }
  0xf6   :  { %1917 = vmatprep.mubr.msk.f32.mxu1 %vm129_vm1, %v478_v45  ;;  %1898 = vmatmul.mubr.msk.f32.gmra.mxu0 %vm129_vm1, %v122_v25 }
  0xf7   :  { %1900 = vmatprep.mubr.msk.f32.mxu0 %vm129_vm1, %v123_v27  ;;  %v510_v49 = vpop.trf.xlu1 }
  0xf9   :  { %v479_v47 = vpop.trf.xlu0 }
  0xfa   :  { %1918 = vmatmul.mubr.msk.f32.gmra.mxu1 %vm129_vm1, %v479_v47  ;;  %1901 = vmatmul.mubr.msk.f32.gmra.mxu0 %vm129_vm1, %v124_v29 }
  0xfb   :  { %1903 = vmatprep.mubr.msk.f32.mxu0 %vm129_vm1, %v125_v31  ;;  %v511_v51 = vpop.trf.xlu1 }
  0xfd   :  { %v480_v48 = vpop.trf.xlu0 }
  0xfe   :  { %1920 = vmatprep.mubr.msk.f32.mxu1 %vm129_vm1, %v480_v48  ;;  %1904 = vmatmul.mubr.msk.f32.gmra.mxu0 %vm129_vm1, %v126_v33 }
  0xff   :  { %1906 = vmatprep.mubr.msk.f32.mxu0 %vm129_vm1, %v127_v35  ;;  %v512_v54 = vpop.trf.xlu1 }
 0x101   :  { %v481_v50 = vpop.trf.xlu0 }
 0x102   :  { %1921 = vmatmul.mubr.msk.f32.gmra.mxu1 %vm129_vm1, %v481_v50  ;;  %1907 = vmatmul.mubr.msk.f32.gmra.mxu0 %vm129_vm1, %v128_v37 }
 0x103   :  { %v513_v56 = vpop.trf.xlu1 }
 0x105   :  { %v482_v52 = vpop.trf.xlu0 }
 0x106   :  { %1923 = vmatprep.mubr.msk.f32.mxu1 %vm129_vm1, %v482_v52 }
 0x107   :  { %v514_v59 = vpop.trf.xlu1 }
 0x109   :  { %v483_v53 = vpop.trf.xlu0 }
 0x10a   :  { %1924 = vmatmul.mubr.msk.f32.gmra.mxu1 %vm129_vm1, %v483_v53 }
 0x10b   :  { %v515_v61 = vpop.trf.xlu1 }
 0x10d   :  { %v484_v55 = vpop.trf.xlu0 }
 0x10e   :  { %1926 = vmatprep.mubr.msk.f32.mxu1 %vm129_vm1, %v484_v55 }
 0x10f   :  { %v516_v0 = vpop.trf.xlu1 }
 0x111   :  { %v485_v57 = vpop.trf.xlu0 }
 0x112   :  { %1927 = vmatmul.mubr.msk.f32.gmra.mxu1 %vm129_vm1, %v485_v57 }
 0x113   :  { %v517_v1 = vpop.trf.xlu1 }
 0x115   :  { %v486_v58 = vpop.trf.xlu0 }
 0x116   :  { %1929 = vmatprep.mubr.msk.f32.mxu1 %vm129_vm1, %v486_v58 }
 0x117   :  { %v518_v2 = vpop.trf.xlu1 }
 0x119   :  { %v487_v60 = vpop.trf.xlu0 }
 0x11a   :  { %1930 = vmatmul.mubr.msk.f32.gmra.mxu1 %vm129_vm1, %v487_v60 }
 0x11b   :  { %v519_v3 = vpop.trf.xlu1 }
 0x11d   :  { %v488_v62 = vpop.trf.xlu0 }
 0x11e   :  { %1932 = vmatprep.mubr.msk.f32.mxu1 %vm129_vm1, %v488_v62 }
 0x11f   :  { %v520_v4 = vpop.trf.xlu1 }
 0x121   :  { %v489_v63 = vpop.trf.xlu0 }
 0x122   :  { %1933 = vmatmul.mubr.msk.f32.gmra.mxu1 %vm129_vm1, %v489_v63 }
 0x123   :  { %1935 = vmatprep.mubr.msk.f32.mxu1 %vm129_vm1, %v506_v39  ;;  %v521_v5 = vpop.trf.xlu1 }
 0x126   :  { %1936 = vmatmul.mubr.msk.f32.gmra.mxu1 %vm129_vm1, %v507_v41 }
 0x127   :  { %1938 = vmatprep.mubr.msk.f32.mxu1 %vm129_vm1, %v508_v44 }
 0x12a   :  { %1939 = vmatmul.mubr.msk.f32.gmra.mxu1 %vm129_vm1, %v509_v46 }
 0x12b   :  { %1941 = vmatprep.mubr.msk.f32.mxu1 %vm129_vm1, %v510_v49 }
 0x12e   :  { %1942 = vmatmul.mubr.msk.f32.gmra.mxu1 %vm129_vm1, %v511_v51 }
 0x12f   :  { %1944 = vmatprep.mubr.msk.f32.mxu1 %vm129_vm1, %v512_v54 }
 0x132   :  { %1945 = vmatmul.mubr.msk.f32.gmra.mxu1 %vm129_vm1, %v513_v56 }
 0x133   :  { %1947 = vmatprep.mubr.msk.f32.mxu1 %vm129_vm1, %v514_v59 }
 0x136   :  { %1948 = vmatmul.mubr.msk.f32.gmra.mxu1 %vm129_vm1, %v515_v61 }
 0x137   :  { %1950 = vmatprep.mubr.msk.f32.mxu1 %vm129_vm1, %v516_v0 }
 0x13a   :  { %1951 = vmatmul.mubr.msk.f32.gmra.mxu1 %vm129_vm1, %v517_v1 }
 0x13b   :  { %1953 = vmatprep.mubr.msk.f32.mxu1 %vm129_vm1, %v518_v2 }
 0x13e   :  { %1954 = vmatmul.mubr.msk.f32.gmra.mxu1 %vm129_vm1, %v519_v3 }
 0x13f   :  { %1956 = vmatprep.mubr.msk.f32.mxu1 %vm129_vm1, %v520_v4 }
 0x142   :  { %1957 = vmatmul.mubr.msk.f32.gmra.mxu1 %vm129_vm1, %v521_v5 }
 0x16a   :  { %v2416_v7 = vpop.f32.mrf.mxu0 }
 0x16c   :  { %v2420_v9 = vpop.f32.mrf.mxu0 }
 0x172   :  { %v1866_v10 = vpop.f32.mrf.mxu0 }
 0x173   :  { %v2425_v11 = vsel %vm848_vm2, %v1866_v10, -1e+30 }
 0x174   :  { %3284 = vst [vmem:[#allocation12_spill] sm:$0xff] %v2425_v11  ;;  %919 = vmax.xlane.f32.xlu0 %v2425_v11  ;;  %v2428_v12 = vpop.f32.mrf.mxu0 }
 0x17a   :  { %v1869_v13 = vpop.f32.mrf.mxu0 }
 0x17b   :  { %v2432_v14 = vsel %vm848_vm2, %v1869_v13, -1e+30 }
 0x17c   :  { %923 = vmax.xlane.f32.xlu0 %v2432_v14  ;;  %v316_v15 = vpop.f32.mrf.mxu0 }
 0x17d   :  { %v2437_v16 = vsel %vm848_vm2, %v316_v15, -1e+30 }
 0x180   :  { %921 = vmax.xlane.f32.xlu0 %v2437_v16 }
 0x182   :  { %v1872_v17 = vpop.f32.mrf.mxu0 }
 0x183   :  { %v2442_v18 = vsel %vm848_vm2, %v1872_v17, -1e+30 }
 0x184   :  { %927 = vmax.xlane.f32.xlu0 %v2442_v18  ;;  %v326_v19 = vpop.f32.mrf.mxu0 }
 0x185   :  { %v2447_v20 = vsel %vm848_vm2, %v326_v19, -1e+30 }
 0x188   :  { %925 = vmax.xlane.f32.xlu0 %v2447_v20 }
 0x18a   :  { %v1875_v21 = vpop.f32.mrf.mxu0 }
 0x18b   :  { %v2452_v22 = vsel %vm848_vm2, %v1875_v21, -1e+30 }
 0x18c   :  { %931 = vmax.xlane.f32.xlu0 %v2452_v22  ;;  %v336_v23 = vpop.f32.mrf.mxu0 }
 0x18d   :  { %v2457_v24 = vsel %vm848_vm2, %v336_v23, -1e+30 }
 0x190   :  { %929 = vmax.xlane.f32.xlu0 %v2457_v24 }
 0x192   :  { %v1878_v25 = vpop.f32.mrf.mxu0 }
 0x193   :  { %v2462_v26 = vsel %vm848_vm2, %v1878_v25, -1e+30 }
 0x194   :  { %935 = vmax.xlane.f32.xlu0 %v2462_v26  ;;  %v346_v27 = vpop.f32.mrf.mxu0 }
 0x195   :  { %v2467_v28 = vsel %vm848_vm2, %v346_v27, -1e+30 }
 0x198   :  { %933 = vmax.xlane.f32.xlu0 %v2467_v28 }
 0x19a   :  { %v1881_v29 = vpop.f32.mrf.mxu0 }
 0x19b   :  { %v2472_v30 = vsel %vm848_vm2, %v1881_v29, -1e+30 }
 0x19c   :  { %939 = vmax.xlane.f32.xlu0 %v2472_v30  ;;  %v356_v31 = vpop.f32.mrf.mxu0 }
 0x19d   :  { %v2477_v32 = vsel %vm848_vm2, %v356_v31, -1e+30 }
 0x1a0   :  { %937 = vmax.xlane.f32.xlu0 %v2477_v32 }
 0x1a2   :  { %v2480_v33 = vpop.f32.mrf.mxu0 }
 0x1a4   :  { %v366_v34 = vpop.f32.mrf.mxu0 }
 0x1a5   :  { %v2484_v35 = vsel %vm848_vm2, %v366_v34, -1e+30 }
 0x1a6   :  { %941 = vmax.xlane.f32.xlu0 %v2484_v35  ;;  %v2487_v36 = vpop.f32.mrf.mxu0 }
 0x1a8   :  { %v2489_v37 = vpop.f32.mrf.mxu0 }
 0x1aa   :  { %v1890_v38 = vpop.f32.mrf.mxu0  ;;  %v2495_v40 = vpop.f32.mrf.mxu1 }
 0x1ab   :  { %v2493_v39 = vsel %vm848_vm2, %v1890_v38, -1e+30 }
 0x1ac   :  { %951 = vmax.xlane.f32.xlu0 %v2493_v39  ;;  %v386_v41 = vpop.f32.mrf.mxu0  ;;  %v2502_v44 = vpop.f32.mrf.mxu1 }
 0x1ad   :  { %v2500_v42 = vsel %vm848_vm2, %v386_v41, -1e+30 }
 0x1ae   :  { %3285 = vst [vmem:[#allocation13_spill] sm:$0xff] %v2500_v42  ;;  %v1893_v43 = vpop.f32.mrf.mxu0 }
 0x1af   :  { %v2507_v45 = vsel %vm848_vm2, %v1893_v43, -1e+30 }
 0x1b0   :  { %949 = vmax.xlane.f32.xlu0 %v2500_v42  ;;  %v396_v47 = vpop.f32.mrf.mxu0 }
 0x1b1   :  { %v2517_v49 = vsel %vm848_vm2, %v396_v47, -1e+30 }
 0x1b2   :  { %v1916_v46 = vpop.f32.mrf.mxu1  ;;  %v1896_v50 = vpop.f32.mrf.mxu0 }
 0x1b3   :  { %v2511_v48 = vsel %vm848_vm2, %v1916_v46, -1e+30  ;;  %v2524_v52 = vsel %vm848_vm2, %v1896_v50, -1e+30 }
 0x1b4   :  { %3286 = vst [vmem:[#allocation14_spill] sm:$0xff] %v2511_v48  ;;  %983 = vmax.xlane.f32.xlu1 %v2511_v48  ;;  %955 = vmax.xlane.f32.xlu0 %v2507_v45  ;;  %v2519_v51 = vpop.f32.mrf.mxu1  ;;  %v406_v54 = vpop.f32.mrf.mxu0 }
 0x1b5   :  { %v2534_v57 = vsel %vm848_vm2, %v406_v54, -1e+30 }
 0x1b6   :  { %v1899_v58 = vpop.f32.mrf.mxu0 }
 0x1b7   :  { %v2544_v60 = vsel %vm848_vm2, %v1899_v58, -1e+30  ;;  %v2625_v58 = vsel %vm848_vm2, %v2428_v12, -1e+30  ;;  %v2643_v12 = vsel %vm848_vm2, %v2487_v36, -1e+30 }
 0x1b8   :  { %953 = vmax.xlane.f32.xlu0 %v2517_v49  ;;  %v416_v62 = vpop.f32.mrf.mxu0  ;;  %3289 = vst [vmem:[#allocation17_spill] sm:$0xff] %v2625_v58  ;;  %3290 = vst [vmem:[#allocation18_spill] sm:$0xff] %v2643_v12 }
 0x1b9   :  { %v2554_v1 = vsel %vm848_vm2, %v416_v62, -1e+30 }
 0x1ba   :  { %v1919_v53 = vpop.f32.mrf.mxu1  ;;  %v1902_v2 = vpop.f32.mrf.mxu0 }
 0x1bb   :  { %v2528_v55 = vsel %vm848_vm2, %v1919_v53, -1e+30  ;;  %v2564_v4 = vsel %vm848_vm2, %v1902_v2, -1e+30 }
 0x1bc   :  { %3287 = vst [vmem:[#allocation15_spill] sm:$0xff] %v2528_v55  ;;  %v707_v56 = vpop.f32.mrf.mxu1  ;;  %987 = vmax.xlane.f32.xlu1 %v2528_v55  ;;  %959 = vmax.xlane.f32.xlu0 %v2524_v52  ;;  %v426_v6 = vpop.f32.mrf.mxu0 }
 0x1bd   :  { %v2538_v59 = vsel %vm848_vm2, %v707_v56, -1e+30  ;;  %v2574_v15 = vsel %vm848_vm2, %v426_v6, -1e+30 }
 0x1be   :  { %3288 = vst [vmem:[#allocation16_spill] sm:$0xff] %v2538_v59  ;;  %v1905_v17 = vpop.f32.mrf.mxu0 }
 0x1bf   :  { %v2584_v21 = vsel %vm848_vm2, %v1905_v17, -1e+30  ;;  %v2667_v17 = vsel %vm848_vm2, %v2489_v37, -1e+30 }
 0x1c0   :  { %985 = vmax.xlane.f32.xlu1 %v2538_v59  ;;  %957 = vmax.xlane.f32.xlu0 %v2534_v57  ;;  %v436_v25 = vpop.f32.mrf.mxu0  ;;  %3293 = vst [vmem:[#allocation21_spill] sm:$0xff] %v2667_v17 }
 0x1c1   :  { %v2594_v31 = vsel %vm848_vm2, %v436_v25, -1e+30 }
 0x1c2   :  { %v1922_v61 = vpop.f32.mrf.mxu1  ;;  %v1908_v34 = vpop.f32.mrf.mxu0 }
 0x1c3   :  { %v2548_v63 = vsel %vm848_vm2, %v1922_v61, -1e+30  ;;  %v2604_v41 = vsel %vm848_vm2, %v1908_v34, -1e+30  ;;  %v2630_v61 = vsel %vm848_vm2, %v2480_v33, -1e+30 }
 0x1c4   :  { %v717_v0 = vpop.f32.mrf.mxu1  ;;  %991 = vmax.xlane.f32.xlu1 %v2548_v63  ;;  %963 = vmax.xlane.f32.xlu0 %v2544_v60  ;;  %v446_v46 = vpop.f32.mrf.mxu0 }
 0x1c5   :  { %v2558_v3 = vsel %vm848_vm2, %v717_v0, -1e+30  ;;  %v2614_v53 = vsel %vm848_vm2, %v446_v46, -1e+30 }
 0x1c8   :  { %989 = vmax.xlane.f32.xlu1 %v2558_v3  ;;  %961 = vmax.xlane.f32.xlu0 %v2554_v1 }
 0x1ca   :  { %v1925_v5 = vpop.f32.mrf.mxu1 }
 0x1cb   :  { %v2568_v10 = vsel %vm848_vm2, %v1925_v5, -1e+30  ;;  %v2652_v5 = vsel %vm848_vm2, %v2416_v7, -1e+30 }
 0x1cc   :  { %v727_v13 = vpop.f32.mrf.mxu1  ;;  %995 = vmax.xlane.f32.xlu1 %v2568_v10  ;;  %967 = vmax.xlane.f32.xlu0 %v2564_v4  ;;  %3291 = vst [vmem:[#allocation19_spill] sm:$0xff] %v2652_v5 }
 0x1cd   :  { %v2578_v19 = vsel %vm848_vm2, %v727_v13, -1e+30 }
 0x1d0   :  { %993 = vmax.xlane.f32.xlu1 %v2578_v19  ;;  %965 = vmax.xlane.f32.xlu0 %v2574_v15 }
 0x1d2   :  { %v1928_v23 = vpop.f32.mrf.mxu1 }
 0x1d3   :  { %v2588_v27 = vsel %vm848_vm2, %v1928_v23, -1e+30  ;;  %v2674_v23 = vsel %vm848_vm2, %v2420_v9, -1e+30 }
 0x1d4   :  { %v737_v29 = vpop.f32.mrf.mxu1  ;;  %999 = vmax.xlane.f32.xlu1 %v2588_v27  ;;  %971 = vmax.xlane.f32.xlu0 %v2584_v21  ;;  %3294 = vst [vmem:[#allocation22_spill] sm:$0xff] %v2674_v23 }
 0x1d5   :  { %v2598_v38 = vsel %vm848_vm2, %v737_v29, -1e+30 }
 0x1d8   :  { %997 = vmax.xlane.f32.xlu1 %v2598_v38  ;;  %969 = vmax.xlane.f32.xlu0 %v2594_v31 }
 0x1da   :  { %v1931_v43 = vpop.f32.mrf.mxu1 }
 0x1db   :  { %v2608_v47 = vsel %vm848_vm2, %v1931_v43, -1e+30 }
 0x1dc   :  { %v747_v50 = vpop.f32.mrf.mxu1  ;;  %1003 = vmax.xlane.f32.xlu1 %v2608_v47  ;;  %975 = vmax.xlane.f32.xlu0 %v2604_v41 }
 0x1dd   :  { %v2618_v54 = vsel %vm848_vm2, %v747_v50, -1e+30 }
 0x1e0   :  { %1001 = vmax.xlane.f32.xlu1 %v2618_v54  ;;  %973 = vmax.xlane.f32.xlu0 %v2614_v53 }
 0x1e2   :  { %v1934_v56 = vpop.f32.mrf.mxu1 }
 0x1e3   :  { %v2636_v0 = vsel %vm848_vm2, %v1934_v56, -1e+30 }
 0x1e4   :  { %v757_v62 = vpop.f32.mrf.mxu1  ;;  %943 = vmax.xlane.f32.xlu1 %v2630_v61  ;;  %917 = vmax.xlane.f32.xlu0 %v2625_v58 }
 0x1e5   :  { %v2656_v6 = vsel %vm848_vm2, %v757_v62, -1e+30 }
 0x1e6   :  { %v2638_v2 = vpop.f32.mrf.mxu1 }
 0x1e8   :  { %1007 = vmax.xlane.f32.xlu1 %v2636_v0  ;;  %947 = vmax.xlane.f32.xlu0 %v2643_v12  ;;  %v2647_v33 = vpop.f32.mrf.mxu1 }
 0x1ea   :  { %v1940_v36 = vpop.f32.mrf.mxu1 }
 0x1eb   :  { %v2662_v13 = vsel %vm848_vm2, %v1940_v36, -1e+30 }
 0x1ec   :  { %1005 = vmax.xlane.f32.xlu1 %v2656_v6  ;;  %915 = vmax.xlane.f32.xlu0 %v2652_v5  ;;  %3292 = vst [vmem:[#allocation20_spill] sm:$0xff] %v2662_v13  ;;  %v777_v7 = vpop.f32.mrf.mxu1 }
 0x1ed   :  { %v2678_v25 = vsel %vm848_vm2, %v777_v7, -1e+30 }
 0x1ee   :  { %3295 = vst [vmem:[#allocation23_spill] sm:$0xff] %v2678_v25  ;;  %v1943_v37 = vpop.f32.mrf.mxu1 }
 0x1ef   :  { %v2684_v29 = vsel %vm848_vm2, %v1943_v37, -1e+30 }
 0x1f0   :  { %945 = vmax.xlane.f32.xlu0 %v2667_v17  ;;  %1015 = vmax.xlane.f32.xlu1 %v2662_v13  ;;  %3296 = vst [vmem:[#allocation24_spill] sm:$0xff] %v2684_v29  ;;  %v787_v34 = vpop.f32.mrf.mxu1 }
 0x1f1   :  { %v2689_v9 = vsel %vm848_vm2, %v787_v34, -1e+30 }
 0x1f2   :  { %3297 = vst [vmem:[#allocation25_spill] sm:$0xff] %v2689_v9  ;;  %v1946_v43 = vpop.f32.mrf.mxu1 }
 0x1f3   :  { %v2694_v46 = vsel %vm848_vm2, %v1946_v43, -1e+30 }
 0x1f4   :  { %913 = vmax.xlane.f32.xlu0 %v2674_v23  ;;  %1013 = vmax.xlane.f32.xlu1 %v2678_v25  ;;  %v797_v50 = vpop.f32.mrf.mxu1 }
 0x1f5   :  { %v2701_v62 = vsel %vm848_vm2, %v797_v50, -1e+30 }
 0x1f6   :  { %v1949_v36 = vpop.f32.mrf.mxu1 }
 0x1f7   :  { %v2706_v7 = vsel %vm848_vm2, %v1949_v36, -1e+30 }
 0x1f8   :  { %1019 = vmax.xlane.f32.xlu1 %v2684_v29  ;;  %v807_v34 = vpop.f32.mrf.mxu1 }
 0x1f9   :  { %v2715_v25 = vsel %vm848_vm2, %v807_v34, -1e+30 }
 0x1fa   :  { %v1952_v50 = vpop.f32.mrf.mxu1 }
 0x1fb   :  { %v2720_v23 = vsel %vm848_vm2, %v1952_v50, -1e+30 }
 0x1fc   :  { %1017 = vmax.xlane.f32.xlu1 %v2689_v9  ;;  %v817_v48 = vpop.f32.mrf.mxu1 }
 0x1fd   :  { %v2697_v56 = vpop.xlane.xlu0 %919  ;;  %v2729_v13 = vsel %vm848_vm2, %v817_v48, -1e+30 }
 0x1fe   :  { %v1955_v34 = vpop.f32.mrf.mxu1 }
 0x1ff   :  { %v2734_v5 = vsel %vm848_vm2, %v1955_v34, -1e+30 }
 0x200   :  { %1023 = vmax.xlane.f32.xlu1 %v2694_v46  ;;  %v827_v9 = vpop.f32.mrf.mxu1 }
 0x201   :  { %v2741_v48 = vsel %vm848_vm2, %v827_v9, -1e+30 }
 0x202   :  { %v1958_v34 = vpop.f32.mrf.mxu1 }
 0x203   :  { %v2746_v29 = vsel %vm848_vm2, %v1958_v34, -1e+30 }
 0x204   :  { %1021 = vmax.xlane.f32.xlu1 %v2701_v62 }
 0x205   :  { %v2708_v37 = vpop.xlane.xlu0 %923 }
 0x208   :  { %1027 = vmax.xlane.f32.xlu1 %v2706_v7 }
 0x209   :  { %v2711_v43 = vpop.xlane.xlu0 %921 }
 0x20c   :  { %1025 = vmax.xlane.f32.xlu1 %v2715_v25 }
 0x20d   :  { %v2722_v36 = vpop.xlane.xlu0 %927 }
 0x210   :  { %1031 = vmax.xlane.f32.xlu1 %v2720_v23 }
 0x211   :  { %v2725_v17 = vpop.xlane.xlu0 %925 }
 0x214   :  { %1029 = vmax.xlane.f32.xlu1 %v2729_v13 }
 0x215   :  { %v932_v50 = vpop.xlane.xlu0 %931 }
 0x216   :  { %v1050_v59 = vsub.f32 %v2452_v22, %v932_v50 }
 0x218   :  { %v1123_v12 = vmul.f32 1.442695, %v1050_v59  ;;  %1035 = vmax.xlane.f32.xlu1 %v2734_v5 }
 0x219   :  { %v930_v58 = vpop.xlane.xlu0 %929 }
 0x21a   :  { %1970 = vpow2.f32 %v1123_v12  ;;  %v1049_v55 = vsub.f32 %v2457_v24, %v930_v58  ;;  %v837_v12 = vpop.f32.mrf.mxu1 }
 0x21c   :  { %v1121_v42 = vmul.f32 1.442695, %v1049_v55  ;;  %1033 = vmax.xlane.f32.xlu1 %v2741_v48  ;;  %v2753_v55 = vsel %vm848_vm2, %v837_v12, -1e+30 }
 0x21d   :  { %v936_v22 = vpop.xlane.xlu0 %935 }
 0x21e   :  { %1972 = vpow2.f32 %v1121_v42  ;;  %v1052_v59 = vsub.f32 %v2462_v26, %v936_v22  ;;  %v2762_v22 = vsel %vm848_vm2, %v2519_v51, -1e+30 }
 0x21f   :  { %3299 = vst [vmem:[#allocation27_spill] sm:$0xff] %v2762_v22 }
 0x220   :  { %v1127_v50 = vmul.f32 1.442695, %v1052_v59  ;;  %1039 = vmax.xlane.f32.xlu1 %v2746_v29 }
 0x221   :  { %v934_v24 = vpop.xlane.xlu0 %933 }
 0x222   :  { %1974 = vpow2.f32 %v1127_v50  ;;  %v1051_v58 = vsub.f32 %v2467_v28, %v934_v24 }
 0x224   :  { %v1125_v9 = vmul.f32 1.442695, %v1051_v58  ;;  %1037 = vmax.xlane.f32.xlu1 %v2753_v55  ;;  %v2781_v58 = vsel %vm848_vm2, %v2495_v40, -1e+30  ;;  %v2799_v40 = vsel %vm848_vm2, %v2502_v44, -1e+30 }
 0x225   :  { %v940_v34 = vpop.xlane.xlu0 %939  ;;  %3303 = vst [vmem:[#allocation31_spill] sm:$0xff] %v2781_v58  ;;  %3307 = vst [vmem:[#allocation35_spill] sm:$0xff] %v2799_v40 }
 0x226   :  { %1976 = vpow2.f32 %v1125_v9  ;;  %v1054_v42 = vsub.f32 %v2472_v30, %v940_v34  ;;  %v2772_v30 = vsel %vm848_vm2, %v2638_v2, -1e+30  ;;  %v2790_v2 = vsel %vm848_vm2, %v2647_v33, -1e+30 }
 0x227   :  { %v2757_v26 = vpop.eup %1970  ;;  %3301 = vst [vmem:[#allocation29_spill] sm:$0xff] %v2772_v30  ;;  %3305 = vst [vmem:[#allocation33_spill] sm:$0xff] %v2790_v2 }
 0x228   :  { %3298 = vst [vmem:[#allocation26_spill] sm:$0xff] %v2757_v26  ;;  %v1131_v59 = vmul.f32 1.442695, %v1054_v42  ;;  %1251 = vadd.xlane.f32.xlu0 %v2757_v26  ;;  %981 = vmax.xlane.f32.xlu1 %v2762_v22 }
 0x229   :  { %v938_v28 = vpop.xlane.xlu0 %937 }
 0x22a   :  { %1978 = vpow2.f32 %v1131_v59  ;;  %v1053_v50 = vsub.f32 %v2477_v32, %v938_v28 }
 0x22b   :  { %v2767_v12 = vpop.eup %1972 }
 0x22c   :  { %3300 = vst [vmem:[#allocation28_spill] sm:$0xff] %v2767_v12  ;;  %v1129_v24 = vmul.f32 1.442695, %v1053_v50  ;;  %1249 = vadd.xlane.f32.xlu0 %v2767_v12  ;;  %1011 = vmax.xlane.f32.xlu1 %v2772_v30 }
 0x22e   :  { %1980 = vpow2.f32 %v1129_v24 }
 0x22f   :  { %v2776_v51 = vpop.eup %1974  ;;  %v942_v33 = vpop.xlane.xlu0 %941 }
 0x230   :  { %3302 = vst [vmem:[#allocation30_spill] sm:$0xff] %v2776_v51  ;;  %1255 = vadd.xlane.f32.xlu0 %v2776_v51  ;;  %979 = vmax.xlane.f32.xlu1 %v2781_v58 }
 0x233   :  { %v2785_v32 = vpop.eup %1976 }
 0x234   :  { %3304 = vst [vmem:[#allocation32_spill] sm:$0xff] %v2785_v32  ;;  %1253 = vadd.xlane.f32.xlu0 %v2785_v32  ;;  %1009 = vmax.xlane.f32.xlu1 %v2790_v2 }
 0x235   :  { %v2808_v59 = vpop.xlane.xlu0 %951 }
 0x237   :  { %v2794_v9 = vpop.eup %1978 }
 0x238   :  { %3306 = vst [vmem:[#allocation34_spill] sm:$0xff] %v2794_v9  ;;  %1259 = vadd.xlane.f32.xlu0 %v2794_v9  ;;  %977 = vmax.xlane.f32.xlu1 %v2799_v40 }
 0x239   :  { %v2812_v50 = vpop.xlane.xlu0 %949 }
 0x23a   :  { %3311 = vst [vmem:[#allocation39_spill] sm:$0xff] %v2812_v50 }
 0x23b   :  { %v2803_v34 = vpop.eup %1980 }
 0x23c   :  { %3308 = vst [vmem:[#allocation36_spill] sm:$0xff] %v2803_v34  ;;  %1257 = vadd.xlane.f32.xlu0 %v2803_v34 }
 0x23d   :  { %v2806_v42 = vpop.xlane.xlu1 %983  ;;  %v2818_v24 = vpop.xlane.xlu0 %955 }
 0x23e   :  { %3309 = vst [vmem:[#allocation37_spill] sm:$0xff] %v2806_v42 }
 0x241   :  { %v2822_v26 = vpop.xlane.xlu0 %953 }
 0x245   :  { %v2810_v28 = vpop.xlane.xlu1 %987  ;;  %v960_v40 = vpop.xlane.xlu0 %959 }
 0x246   :  { %3310 = vst [vmem:[#allocation38_spill] sm:$0xff] %v2810_v28 }
 0x249   :  { %v2814_v8 = vpop.xlane.xlu1 %985  ;;  %v2827_v42 = vpop.xlane.xlu0 %957 }
 0x24a   :  { %3312 = vst [vmem:[#allocation40_spill] sm:$0xff] %v2814_v8 }
 0x24d   :  { %v2816_v44 = vpop.xlane.xlu1 %991 }
 0x251   :  { %v2820_v12 = vpop.xlane.xlu1 %989 }
 0x255   :  { %v996_v32 = vpop.xlane.xlu1 %995 }
 0x256   :  { %v1082_v51 = vsub.f32 %v2568_v10, %v996_v32 }
 0x258   :  { %v1187_v34 = vmul.f32 1.442695, %v1082_v51  ;;  %v964_v51 = vpop.xlane.xlu0 %963 }
 0x259   :  { %v994_v9 = vpop.xlane.xlu1 %993 }
 0x25a   :  { %v1081_v2 = vsub.f32 %v2578_v19, %v994_v9  ;;  %1982 = vpow2.f32 %v1187_v34  ;;  %v1055_v34 = vsub.f32 %v2484_v35, %v942_v33 }
 0x25c   :  { %v1185_v58 = vmul.f32 1.442695, %v1081_v2 }
 0x25d   :  { %v1000_v30 = vpop.xlane.xlu1 %999 }
 0x25e   :  { %v1084_v22 = vsub.f32 %v2588_v27, %v1000_v30  ;;  %1984 = vpow2.f32 %v1185_v58  ;;  %v962_v58 = vpop.xlane.xlu0 %961 }
 0x260   :  { %v1191_v8 = vmul.f32 1.442695, %v1084_v22 }
 0x261   :  { %v998_v28 = vpop.xlane.xlu1 %997 }
 0x262   :  { %v1083_v50 = vsub.f32 %v2598_v38, %v998_v28  ;;  %1986 = vpow2.f32 %v1191_v8  ;;  %v1064_v8 = vsub.f32 %v2524_v52, %v960_v40 }
 0x264   :  { %v1189_v11 = vmul.f32 1.442695, %v1083_v50 }
 0x265   :  { %v1004_v10 = vpop.xlane.xlu1 %1003 }
 0x266   :  { %v1086_v32 = vsub.f32 %v2608_v47, %v1004_v10  ;;  %1988 = vpow2.f32 %v1189_v11  ;;  %v968_v10 = vpop.xlane.xlu0 %967 }
 0x267   :  { %v2831_v19 = vpop.eup %1982 }
 0x268   :  { %3313 = vst [vmem:[#allocation41_spill] sm:$0xff] %v2831_v19  ;;  %v1195_v2 = vmul.f32 1.442695, %v1086_v32  ;;  %1315 = vadd.xlane.f32.xlu1 %v2831_v19 }
 0x269   :  { %v1002_v27 = vpop.xlane.xlu1 %1001 }
 0x26a   :  { %v1085_v30 = vsub.f32 %v2618_v54, %v1002_v27  ;;  %1990 = vpow2.f32 %v1195_v2  ;;  %v1133_v54 = vmul.f32 1.442695, %v1055_v34  ;;  %v966_v52 = vpop.xlane.xlu0 %965  ;;  %v1065_v34 = vsub.f32 %v2554_v1, %v962_v58 }
 0x26b   :  { %v2835_v22 = vpop.eup %1984  ;;  %v1067_v58 = vsub.f32 %v2574_v15, %v966_v52 }
 0x26c   :  { %3314 = vst [vmem:[#allocation42_spill] sm:$0xff] %v2835_v22  ;;  %v1193_v38 = vmul.f32 1.442695, %v1085_v30  ;;  %1313 = vadd.xlane.f32.xlu1 %v2835_v22  ;;  %v1066_v30 = vsub.f32 %v2544_v60, %v964_v51  ;;  %v1153_v51 = vmul.f32 1.442695, %v1065_v34 }
 0x26d   :  { %v944_v9 = vpop.xlane.xlu1 %943 }
 0x26e   :  { %v1056_v11 = vsub.f32 %v2630_v61, %v944_v9  ;;  %1992 = vpow2.f32 %v1193_v38  ;;  %v1151_v61 = vmul.f32 1.442695, %v1064_v8  ;;  %v1155_v9 = vmul.f32 1.442695, %v1066_v30  ;;  %v972_v60 = vpop.xlane.xlu0 %971 }
 0x26f   :  { %v2840_v47 = vpop.eup %1986 }
 0x270   :  { %v1135_v28 = vmul.f32 1.442695, %v1056_v11  ;;  %1319 = vadd.xlane.f32.xlu1 %v2840_v47 }
 0x271   :  { %v1008_v50 = vpop.xlane.xlu1 %1007 }
 0x272   :  { %v1088_v32 = vsub.f32 %v2636_v0, %v1008_v50  ;;  %1994 = vpow2.f32 %v1135_v28  ;;  %v1068_v28 = vsub.f32 %v2564_v4, %v968_v10 }
 0x273   :  { %v2845_v2 = vpop.eup %1988  ;;  %1996 = vpow2.f32 %v1133_v54 }
 0x274   :  { %3315 = vst [vmem:[#allocation43_spill] sm:$0xff] %v2845_v2  ;;  %v1199_v27 = vmul.f32 1.442695, %v1088_v32  ;;  %1317 = vadd.xlane.f32.xlu1 %v2845_v2  ;;  %v1159_v1 = vmul.f32 1.442695, %v1068_v28 }
 0x275   :  { %v1006_v35 = vpop.xlane.xlu1 %1005 }
 0x276   :  { %v1087_v33 = vsub.f32 %v2656_v6, %v1006_v35  ;;  %1998 = vpow2.f32 %v1199_v27  ;;  %v970_v27 = vpop.xlane.xlu0 %969  ;;  %v1157_v35 = vmul.f32 1.442695, %v1067_v58 }
 0x277   :  { %v2850_v38 = vpop.eup %1990  ;;  %2000 = vpow2.f32 %v1151_v61  ;;  %v1070_v61 = vsub.f32 %v2584_v21, %v972_v60 }
 0x278   :  { %v1197_v40 = vmul.f32 1.442695, %v1087_v33  ;;  %1323 = vadd.xlane.f32.xlu1 %v2850_v38 }
 0x279   :  { %v2853_v0 = vpop.xlane.xlu1 %1015 }
 0x27a   :  { %2002 = vpow2.f32 %v1197_v40  ;;  %v976_v30 = vpop.xlane.xlu0 %975  ;;  %v1163_v40 = vmul.f32 1.442695, %v1070_v61 }
 0x27b   :  { %v2856_v11 = vpop.eup %1992  ;;  %2004 = vpow2.f32 %v1155_v9  ;;  %v1069_v9 = vsub.f32 %v2594_v31, %v970_v27  ;;  %v1072_v28 = vsub.f32 %v2604_v41, %v976_v30  ;;  %v1048_v30 = vsub.f32 %v2442_v18, %v2722_v36 }
 0x27c   :  { %1321 = vadd.xlane.f32.xlu1 %v2856_v11  ;;  %2006 = vpow2.f32 %v1153_v51 }
 0x27d   :  { %v2859_v6 = vpop.xlane.xlu1 %1013  ;;  %2008 = vpow2.f32 %v1159_v1  ;;  %v1161_v60 = vmul.f32 1.442695, %v1069_v9  ;;  %v1167_v27 = vmul.f32 1.442695, %v1072_v28  ;;  %v1119_v28 = vmul.f32 1.442695, %v1048_v30 }
 0x27e   :  { %2010 = vpow2.f32 %v1157_v35  ;;  %v974_v58 = vpop.xlane.xlu0 %973 }
 0x27f   :  { %v2862_v50 = vpop.eup %1994  ;;  %v1071_v35 = vsub.f32 %v2614_v53, %v974_v58 }
 0x280   :  { %1263 = vadd.xlane.f32.xlu0 %v2862_v50  ;;  %v2867_v8 = vpop.eup %1996 }
 0x281   :  { %v2865_v54 = vpop.xlane.xlu1 %1019 }
 0x283   :  { %v2870_v32 = vpop.eup %1998 }
 0x284   :  { %1261 = vadd.xlane.f32.xlu0 %v2867_v8  ;;  %1327 = vadd.xlane.f32.xlu1 %v2870_v32  ;;  %v2876_v10 = vpop.eup %2000 }
 0x285   :  { %v2874_v4 = vpop.xlane.xlu1 %1017 }
 0x287   :  { %v2879_v33 = vpop.eup %2002 }
 0x288   :  { %1279 = vadd.xlane.f32.xlu0 %v2876_v10  ;;  %1325 = vadd.xlane.f32.xlu1 %v2879_v33  ;;  %v2885_v34 = vpop.eup %2004 }
 0x289   :  { %v1024_v15 = vpop.xlane.xlu1 %1023  ;;  %v2891_v1 = vpop.eup %2006 }
 0x28a   :  { %v1096_v52 = vsub.f32 %v2694_v46, %v1024_v15  ;;  %v2896_v61 = vpop.eup %2008 }
 0x28b   :  { %v2902_v9 = vpop.eup %2010 }
 0x28c   :  { %v1215_v51 = vmul.f32 1.442695, %v1096_v52  ;;  %1283 = vadd.xlane.f32.xlu0 %v2885_v34 }
 0x28d   :  { %v2888_v21 = vpop.xlane.xlu1 %1021 }
 0x28e   :  { %2012 = vpow2.f32 %v1215_v51 }
 0x28f   :  { %2014 = vpow2.f32 %v1163_v40  ;;  %v1165_v40 = vmul.f32 1.442695, %v1071_v35 }
 0x290   :  { %1281 = vadd.xlane.f32.xlu0 %v2891_v1  ;;  %2016 = vpow2.f32 %v1161_v60 }
 0x291   :  { %v1028_v46 = vpop.xlane.xlu1 %1027 }
 0x292   :  { %v1098_v31 = vsub.f32 %v2706_v7, %v1028_v46 }
 0x294   :  { %v1219_v15 = vmul.f32 1.442695, %v1098_v31  ;;  %1287 = vadd.xlane.f32.xlu0 %v2896_v61 }
 0x295   :  { %v1026_v52 = vpop.xlane.xlu1 %1025 }
 0x296   :  { %2018 = vpow2.f32 %v1219_v15  ;;  %v1097_v41 = vsub.f32 %v2715_v25, %v1026_v52  ;;  %v1063_v25 = vsub.f32 %v2534_v57, %v2827_v42 }
 0x297   :  { %2020 = vpow2.f32 %v1167_v27 }
 0x298   :  { %v1217_v7 = vmul.f32 1.442695, %v1097_v41  ;;  %1285 = vadd.xlane.f32.xlu0 %v2902_v9  ;;  %v1149_v31 = vmul.f32 1.442695, %v1063_v25 }
 0x299   :  { %v1032_v53 = vpop.xlane.xlu1 %1031 }
 0x29a   :  { %2022 = vpow2.f32 %v1217_v7  ;;  %v1100_v51 = vsub.f32 %v2720_v23, %v1032_v53  ;;  %v1047_v23 = vsub.f32 %v2447_v20, %v2725_v17 }
 0x29b   :  { %v2906_v60 = vpop.eup %2012  ;;  %2024 = vpow2.f32 %v1165_v40 }
 0x29c   :  { %3316 = vst [vmem:[#allocation44_spill] sm:$0xff] %v2906_v60  ;;  %v2910_v58 = vpop.eup %2014  ;;  %v1223_v18 = vmul.f32 1.442695, %v1100_v51  ;;  %1343 = vadd.xlane.f32.xlu1 %v2906_v60  ;;  %v1117_v52 = vmul.f32 1.442695, %v1047_v23 }
 0x29d   :  { %1291 = vadd.xlane.f32.xlu0 %v2910_v58  ;;  %v1030_v36 = vpop.xlane.xlu1 %1029  ;;  %v2917_v27 = vpop.eup %2016 }
 0x29e   :  { %2026 = vpow2.f32 %v1223_v18  ;;  %v1099_v46 = vsub.f32 %v2729_v13, %v1030_v36  ;;  %v1062_v13 = vsub.f32 %v2507_v45, %v2818_v24  ;;  %v1080_v36 = vsub.f32 %v2548_v63, %v2816_v44 }
 0x29f   :  { %2028 = vpow2.f32 %v1119_v28  ;;  %v1095_v63 = vsub.f32 %v2701_v62, %v2888_v21 }
 0x2a0   :  { %v1221_v57 = vmul.f32 1.442695, %v1099_v46  ;;  %v1147_v7 = vmul.f32 1.442695, %v1062_v13 }
 0x2a1   :  { %1289 = vadd.xlane.f32.xlu0 %v2917_v27  ;;  %v1036_v42 = vpop.xlane.xlu1 %1035  ;;  %v1213_v62 = vmul.f32 1.442695, %v1095_v63 }
 0x2a2   :  { %2030 = vpow2.f32 %v1221_v57  ;;  %v1102_v35 = vsub.f32 %v2734_v5, %v1036_v42  ;;  %v1046_v5 = vsub.f32 %v2432_v14, %v2708_v37  ;;  %v1061_v14 = vsub.f32 %v2517_v49, %v2822_v26 }
 0x2a3   :  { %v2921_v15 = vpop.eup %2018  ;;  %2032 = vpow2.f32 %v1149_v31  ;;  %v1045_v49 = vsub.f32 %v2437_v16, %v2711_v43  ;;  %v1183_v57 = vmul.f32 1.442695, %v1080_v36  ;;  %v1060_v42 = vsub.f32 %v2493_v39, %v2808_v59  ;;  %v918_v43 = vpop.xlane.xlu0 %917  ;;  %v3325_v36 = vld [vmem:[#allocation17_spill] sm:$0xff] }
 0x2a4   :  { %3317 = vst [vmem:[#allocation45_spill] sm:$0xff] %v2921_v15  ;;  %v2925_v41 = vpop.eup %2020  ;;  %v1227_v20 = vmul.f32 1.442695, %v1102_v35  ;;  %1347 = vadd.xlane.f32.xlu1 %v2921_v15  ;;  %v1145_v26 = vmul.f32 1.442695, %v1061_v14  ;;  %v1079_v35 = vsub.f32 %v2558_v3, %v2820_v12 }
 0x2a5   :  { %1295 = vadd.xlane.f32.xlu0 %v2925_v41  ;;  %v1034_v17 = vpop.xlane.xlu1 %1033  ;;  %v1113_v44 = vmul.f32 1.442695, %v1045_v49  ;;  %v1143_v39 = vmul.f32 1.442695, %v1060_v42 }
 0x2a6   :  { %2034 = vpow2.f32 %v1227_v20  ;;  %v1101_v30 = vsub.f32 %v2741_v48, %v1034_v17  ;;  %v1115_v48 = vmul.f32 1.442695, %v1046_v5  ;;  %v1181_v20 = vmul.f32 1.442695, %v1079_v35  ;;  %v3328_v35 = vld [vmem:[#allocation18_spill] sm:$0xff] }
 0x2a7   :  { %v2930_v40 = vpop.eup %2022  ;;  %2036 = vpow2.f32 %v1117_v52  ;;  %v3319_v52 = vld [vmem:[#allocation12_spill] sm:$0xff]  ;;  %v948_v17 = vpop.xlane.xlu0 %947 }
 0x2a8   :  { %3318 = vst [vmem:[#allocation46_spill] sm:$0xff] %v2930_v40  ;;  %v2934_v45 = vpop.eup %2024  ;;  %v1225_v24 = vmul.f32 1.442695, %v1101_v30  ;;  %1345 = vadd.xlane.f32.xlu1 %v2930_v40  ;;  %v1044_v13 = vsub.f32 %v3319_v52, %v2697_v56  ;;  %v3320_v30 = vld [vmem:[#allocation24_spill] sm:$0xff]  ;;  %v3322_v56 = vld [vmem:[#allocation13_spill] sm:$0xff] }
 0x2a9   :  { %1293 = vadd.xlane.f32.xlu0 %v2934_v45  ;;  %v1040_v53 = vpop.xlane.xlu1 %1039  ;;  %v1094_v5 = vsub.f32 %v3320_v30, %v2865_v54 }
 0x2aa   :  { %2038 = vpow2.f32 %v1225_v24  ;;  %v1104_v51 = vsub.f32 %v2746_v29, %v1040_v53  ;;  %v1111_v12 = vmul.f32 1.442695, %v1044_v13  ;;  %v3331_v13 = vld [vmem:[#allocation16_spill] sm:$0xff] }
 0x2ab   :  { %v2939_v28 = vpop.eup %2026  ;;  %2040 = vpow2.f32 %v1147_v7  ;;  %v3321_v7 = vld [vmem:[#allocation39_spill] sm:$0xff] }
 0x2ac   :  { %v2943_v37 = vpop.eup %2028  ;;  %v1231_v25 = vmul.f32 1.442695, %v1104_v51  ;;  %1351 = vadd.xlane.f32.xlu1 %v2939_v28  ;;  %v1059_v24 = vsub.f32 %v3322_v56, %v3321_v7  ;;  %v3323_v51 = vld [vmem:[#allocation38_spill] sm:$0xff] }
 0x2ad   :  { %1247 = vadd.xlane.f32.xlu0 %v2943_v37  ;;  %v1038_v18 = vpop.xlane.xlu1 %1037 }
 0x2ae   :  { %2042 = vpow2.f32 %v1231_v25  ;;  %v1103_v29 = vsub.f32 %v2753_v55, %v1038_v18  ;;  %v1211_v25 = vmul.f32 1.442695, %v1094_v5  ;;  %v1141_v18 = vmul.f32 1.442695, %v1059_v24  ;;  %v3335_v24 = vld [vmem:[#allocation20_spill] sm:$0xff] }
 0x2af   :  { %v2950_v46 = vpop.eup %2030  ;;  %2044 = vpow2.f32 %v1115_v48  ;;  %v3324_v48 = vld [vmem:[#allocation15_spill] sm:$0xff] }
 0x2b0   :  { %v2954_v23 = vpop.eup %2032  ;;  %v1229_v31 = vmul.f32 1.442695, %v1103_v29  ;;  %1349 = vadd.xlane.f32.xlu1 %v2950_v46  ;;  %v1078_v14 = vsub.f32 %v3324_v48, %v3323_v51  ;;  %v1043_v29 = vsub.f32 %v3325_v36, %v918_v43  ;;  %v3330_v43 = vld [vmem:[#allocation40_spill] sm:$0xff]  ;;  %v1092_v51 = vsub.f32 %v3335_v24, %v2853_v0 }
 0x2b1   :  { %1277 = vadd.xlane.f32.xlu0 %v2954_v23  ;;  %v982_v36 = vpop.xlane.xlu1 %981 }
 0x2b2   :  { %2046 = vpow2.f32 %v1229_v31  ;;  %v1179_v31 = vmul.f32 1.442695, %v1078_v14  ;;  %v1109_v42 = vmul.f32 1.442695, %v1043_v29  ;;  %v1207_v0 = vmul.f32 1.442695, %v1092_v51 }
 0x2b3   :  { %v2960_v55 = vpop.eup %2034  ;;  %2048 = vpow2.f32 %v1145_v26  ;;  %v916_v26 = vpop.xlane.xlu0 %915  ;;  %v3347_v51 = vld [vmem:[#allocation27_spill] sm:$0xff] }
 0x2b4   :  { %v2964_v16 = vpop.eup %2036  ;;  %1355 = vadd.xlane.f32.xlu1 %v2960_v55  ;;  %2050 = vpow2.f32 %v1183_v57  ;;  %v3326_v57 = vld [vmem:[#allocation25_spill] sm:$0xff] }
 0x2b5   :  { %1245 = vadd.xlane.f32.xlu0 %v2964_v16  ;;  %2052 = vpow2.f32 %v1113_v44  ;;  %v1093_v63 = vsub.f32 %v3326_v57, %v2874_v4  ;;  %v3340_v57 = vld [vmem:[#allocation14_spill] sm:$0xff] }
 0x2b6   :  { %2054 = vpow2.f32 %v1213_v62  ;;  %v1058_v62 = vsub.f32 %v3328_v35, %v948_v17 }
 0x2b7   :  { %v2970_v21 = vpop.eup %2038  ;;  %2056 = vpow2.f32 %v1143_v39  ;;  %v1077_v39 = vsub.f32 %v3331_v13, %v3330_v43  ;;  %v1209_v30 = vmul.f32 1.442695, %v1093_v63 }
 0x2b8   :  { %v2974_v59 = vpop.eup %2040  ;;  %1353 = vadd.xlane.f32.xlu1 %v2970_v21  ;;  %2058 = vpow2.f32 %v1181_v20  ;;  %v946_v20 = vpop.xlane.xlu0 %945  ;;  %v1139_v4 = vmul.f32 1.442695, %v1058_v62  ;;  %v3342_v62 = vld [vmem:[#allocation22_spill] sm:$0xff] }
 0x2b9   :  { %1275 = vadd.xlane.f32.xlu0 %v2974_v59  ;;  %2060 = vpow2.f32 %v1111_v12  ;;  %v3333_v12 = vld [vmem:[#allocation19_spill] sm:$0xff]  ;;  %v1177_v17 = vmul.f32 1.442695, %v1077_v39  ;;  %v1012_v39 = vpop.xlane.xlu1 %1011 }
 0x2ba   :  { %2062 = vpow2.f32 %v1211_v25  ;;  %v1042_v7 = vsub.f32 %v3333_v12, %v916_v26  ;;  %v3337_v25 = vld [vmem:[#allocation21_spill] sm:$0xff] }
 0x2bb   :  { %v2980_v3 = vpop.eup %2042  ;;  %2064 = vpow2.f32 %v1141_v18  ;;  %v1057_v18 = vsub.f32 %v3337_v25, %v946_v20 }
 0x2bc   :  { %v2984_v53 = vpop.eup %2044  ;;  %1359 = vadd.xlane.f32.xlu1 %v2980_v3  ;;  %2066 = vpow2.f32 %v1179_v31  ;;  %v1107_v14 = vmul.f32 1.442695, %v1042_v7  ;;  %v914_v26 = vpop.xlane.xlu0 %913  ;;  %v3339_v31 = vld [vmem:[#allocation37_spill] sm:$0xff] }
 0x2bd   :  { %1243 = vadd.xlane.f32.xlu0 %v2984_v53  ;;  %2068 = vpow2.f32 %v1109_v42  ;;  %v1076_v63 = vsub.f32 %v3340_v57, %v3339_v31  ;;  %v1137_v35 = vmul.f32 1.442695, %v1057_v18  ;;  %v1041_v43 = vsub.f32 %v3342_v62, %v914_v26  ;;  %v980_v18 = vpop.xlane.xlu1 %979  ;;  %v3350_v31 = vld [vmem:[#allocation29_spill] sm:$0xff]  ;;  %v3353_v62 = vld [vmem:[#allocation31_spill] sm:$0xff] }
 0x2be   :  { %2070 = vpow2.f32 %v1209_v30  ;;  %v3344_v30 = vld [vmem:[#allocation23_spill] sm:$0xff]  ;;  %v1090_v57 = vsub.f32 %v3350_v31, %v1012_v39 }
 0x2bf   :  { %v2990_v54 = vpop.eup %2046  ;;  %2072 = vpow2.f32 %v1139_v4  ;;  %v1175_v20 = vmul.f32 1.442695, %v1076_v63  ;;  %v1091_v4 = vsub.f32 %v3344_v30, %v2859_v6  ;;  %v1105_v7 = vmul.f32 1.442695, %v1041_v43 }
 0x2c0   :  { %v2993_v49 = vpop.eup %2048  ;;  %1357 = vadd.xlane.f32.xlu1 %v2990_v54  ;;  %2074 = vpow2.f32 %v1177_v17  ;;  %v1074_v43 = vsub.f32 %v3353_v62, %v980_v18  ;;  %v3072_v62 = vpop.xlane.xlu0 %1251 }
 0x2c1   :  { %1273 = vadd.xlane.f32.xlu0 %v2993_v49  ;;  %v2999_v44 = vpop.eup %2050  ;;  %2076 = vpow2.f32 %v1107_v14  ;;  %v1205_v24 = vmul.f32 1.442695, %v1091_v4  ;;  %v1075_v14 = vsub.f32 %v3347_v51, %v982_v36  ;;  %v1010_v36 = vpop.xlane.xlu1 %1009  ;;  %v3356_v4 = vld [vmem:[#allocation33_spill] sm:$0xff] }
 0x2c2   :  { %3327 = vst [vmem:[#allocation12_spill] sm:$0xff] %v2999_v44  ;;  %v3002_v52 = vpop.eup %2052  ;;  %2078 = vpow2.f32 %v1207_v0  ;;  %v1171_v39 = vmul.f32 1.442695, %v1074_v43 }
 0x2c3   :  { %3329 = vst [vmem:[#allocation24_spill] sm:$0xff] %v3002_v52  ;;  %v3008_v5 = vpop.eup %2054  ;;  %2080 = vpow2.f32 %v1137_v35  ;;  %v1173_v6 = vmul.f32 1.442695, %v1075_v14  ;;  %v1203_v35 = vmul.f32 1.442695, %v1090_v57 }
 0x2c4   :  { %1311 = vadd.xlane.f32.xlu1 %v2999_v44  ;;  %3332 = vst [vmem:[#allocation39_spill] sm:$0xff] %v3008_v5  ;;  %v3011_v56 = vpop.eup %2056  ;;  %2082 = vpow2.f32 %v1175_v20  ;;  %v3078_v43 = vpop.xlane.xlu0 %1249 }
 0x2c5   :  { %1241 = vadd.xlane.f32.xlu0 %v3002_v52  ;;  %3334 = vst [vmem:[#allocation13_spill] sm:$0xff] %v3011_v56  ;;  %v3017_v48 = vpop.eup %2058  ;;  %2084 = vpow2.f32 %v1105_v7  ;;  %v1089_v7 = vsub.f32 %v3356_v4, %v1010_v36  ;;  %v978_v51 = vpop.xlane.xlu1 %977 }
 0x2c6   :  { %3336 = vst [vmem:[#allocation38_spill] sm:$0xff] %v3017_v48  ;;  %v3020_v29 = vpop.eup %2060  ;;  %2086 = vpow2.f32 %v1205_v24 }
 0x2c7   :  { %3338 = vst [vmem:[#allocation15_spill] sm:$0xff] %v3020_v29  ;;  %v3026_v42 = vpop.eup %2062  ;;  %2088 = vpow2.f32 %v1173_v6  ;;  %v1201_v18 = vmul.f32 1.442695, %v1089_v7  ;;  %v3359_v6 = vld [vmem:[#allocation35_spill] sm:$0xff] }
 0x2c8   :  { %1341 = vadd.xlane.f32.xlu1 %v3008_v5  ;;  %3341 = vst [vmem:[#allocation17_spill] sm:$0xff] %v3026_v42  ;;  %v3029_v13 = vpop.eup %2064  ;;  %2090 = vpow2.f32 %v1203_v35  ;;  %v1073_v31 = vsub.f32 %v3359_v6, %v978_v51  ;;  %v1256_v7 = vpop.xlane.xlu0 %1255 }
 0x2c9   :  { %1271 = vadd.xlane.f32.xlu0 %v3011_v56  ;;  %3343 = vst [vmem:[#allocation25_spill] sm:$0xff] %v3029_v13  ;;  %v3035_v12 = vpop.eup %2066  ;;  %2092 = vpow2.f32 %v1171_v39 }
 0x2ca   :  { %3345 = vst [vmem:[#allocation18_spill] sm:$0xff] %v3035_v12  ;;  %v3037_v17 = vpop.eup %2068  ;;  %2094 = vpow2.f32 %v1201_v18  ;;  %v1169_v36 = vmul.f32 1.442695, %v1073_v31 }
 0x2cb   :  { %3346 = vst [vmem:[#allocation40_spill] sm:$0xff] %v3037_v17  ;;  %v3042_v25 = vpop.eup %2070 }
 0x2cc   :  { %1309 = vadd.xlane.f32.xlu1 %v3017_v48  ;;  %3348 = vst [vmem:[#allocation16_spill] sm:$0xff] %v3042_v25  ;;  %v3044_v26 = vpop.eup %2072  ;;  %2096 = vpow2.f32 %v1169_v36  ;;  %v1254_v18 = vpop.xlane.xlu0 %1253 }
 0x2cd   :  { %1239 = vadd.xlane.f32.xlu0 %v3020_v29  ;;  %3349 = vst [vmem:[#allocation19_spill] sm:$0xff] %v3044_v26  ;;  %v3049_v63 = vpop.eup %2074 }
 0x2ce   :  { %3351 = vst [vmem:[#allocation20_spill] sm:$0xff] %v3049_v63  ;;  %v3051_v0 = vpop.eup %2076 }
 0x2cf   :  { %3352 = vst [vmem:[#allocation21_spill] sm:$0xff] %v3051_v0  ;;  %v3056_v20 = vpop.eup %2078 }
 0x2d0   :  { %1339 = vadd.xlane.f32.xlu1 %v3026_v42  ;;  %3354 = vst [vmem:[#allocation37_spill] sm:$0xff] %v3056_v20  ;;  %v3058_v30 = vpop.eup %2080  ;;  %v1260_v36 = vpop.xlane.xlu0 %1259 }
 0x2d1   :  { %1269 = vadd.xlane.f32.xlu0 %v3029_v13  ;;  %3355 = vst [vmem:[#allocation14_spill] sm:$0xff] %v3058_v30  ;;  %v3063_v24 = vpop.eup %2082 }
 0x2d2   :  { %3357 = vst [vmem:[#allocation22_spill] sm:$0xff] %v3063_v24  ;;  %v3065_v14 = vpop.eup %2084 }
 0x2d3   :  { %3358 = vst [vmem:[#allocation23_spill] sm:$0xff] %v3065_v14  ;;  %v3070_v57 = vpop.eup %2086 }
 0x2d4   :  { %1307 = vadd.xlane.f32.xlu1 %v3035_v12  ;;  %3360 = vst [vmem:[#allocation27_spill] sm:$0xff] %v3070_v57  ;;  %v3075_v35 = vpop.eup %2088  ;;  %v3104_v12 = vld [vmem:[#allocation7] sm:$0xf] }
 0x2d5   :  { %1237 = vadd.xlane.f32.xlu0 %v3037_v17  ;;  %3361 = vst [vmem:[#allocation29_spill] sm:$0xff] %v3075_v35  ;;  %v3080_v4 = vpop.eup %2090  ;;  %3366 = vst [vmem:[#allocation48_spill] sm:$0xff] %v3104_v12  ;;  %1823 = vmatprep.mubr.f32.mxu0 %v3104_v12 }
 0x2d6   :  { %3362 = vst [vmem:[#allocation31_spill] sm:$0xff] %v3080_v4  ;;  %v3083_v39 = vpop.eup %2092 }
 0x2d7   :  { %3363 = vst [vmem:[#allocation33_spill] sm:$0xff] %v3083_v39  ;;  %v3086_v51 = vpop.eup %2094 }
 0x2d8   :  { %1337 = vadd.xlane.f32.xlu1 %v3042_v25  ;;  %3364 = vst [vmem:[#allocation35_spill] sm:$0xff] %v3086_v51 }
 0x2d9   :  { %1267 = vadd.xlane.f32.xlu0 %v3044_v26  ;;  %v3089_v6 = vpop.eup %2096 }
 0x2da   :  { %3365 = vst [vmem:[#allocation47_spill] sm:$0xff] %v3089_v6 }
 0x2dc   :  { %1305 = vadd.xlane.f32.xlu1 %v3049_v63 }
 0x2dd   :  { %1235 = vadd.xlane.f32.xlu0 %v3051_v0 }
 0x2e0   :  { %1335 = vadd.xlane.f32.xlu1 %v3056_v20 }
 0x2e1   :  { %1265 = vadd.xlane.f32.xlu0 %v3058_v30 }
 0x2e4   :  { %1303 = vadd.xlane.f32.xlu1 %v3063_v24 }
 0x2e5   :  { %1233 = vadd.xlane.f32.xlu0 %v3065_v14 }
 0x2e8   :  { %1333 = vadd.xlane.f32.xlu1 %v3070_v57 }
 0x2ec   :  { %1301 = vadd.xlane.f32.xlu1 %v3075_v35 }
 0x2f0   :  { %1331 = vadd.xlane.f32.xlu1 %v3080_v4  ;;  %v1258_v4 = vpop.xlane.xlu0 %1257 }
 0x2f1   :  { %v3092_v31 = vpop.xlane.xlu1 %1315 }
 0x2f4   :  { %1299 = vadd.xlane.f32.xlu1 %v3083_v39 }
 0x2f5   :  { %v3094_v35 = vpop.xlane.xlu1 %1313 }
 0x2f8   :  { %1329 = vadd.xlane.f32.xlu1 %v3086_v51 }
 0x2f9   :  { %v3096_v57 = vpop.xlane.xlu1 %1319 }
 0x2fc   :  { %1297 = vadd.xlane.f32.xlu1 %v3089_v6  ;;  %v3106_v6 = vld [vmem:[#allocation7 + $0x4] sm:$0xf] }
 0x2fd   :  { %v3098_v39 = vpop.xlane.xlu1 %1317  ;;  %3367 = vst [vmem:[#allocation49_spill] sm:$0xff] %v3106_v6  ;;  %1857 = vmatprep.mubr.f32.mxu1 %v3106_v6 }
 0x301   :  { %v3102_v51 = vpop.xlane.xlu1 %1323 }
 0x305   :  { %v3110_v42 = vpop.xlane.xlu1 %1321 }
 0x309   :  { %v1264_v24 = vpop.xlane.xlu0 %1263 }
 0x30a   :  { %2098 = vrcp.f32 %v1264_v24 }
 0x30d   :  { %v1262_v20 = vpop.xlane.xlu0 %1261  ;;  %v1328_v30 = vpop.xlane.xlu1 %1327 }
 0x311   :  { %v3100_v63 = vpop.xlane.xlu0 %1279  ;;  %v1326_v44 = vpop.xlane.xlu1 %1325 }
 0x315   :  { %v1284_v25 = vpop.xlane.xlu0 %1283 }
 0x317   :  { %v2099_v56 = vpop.eup %2098 }
 0x319   :  { %v1282_v14 = vpop.xlane.xlu0 %1281 }
 0x31d   :  { %v1288_v48 = vpop.xlane.xlu0 %1287 }
 0x321   :  { %v1286_v5 = vpop.xlane.xlu0 %1285 }
 0x325   :  { %v3112_v26 = vpop.xlane.xlu1 %1343 }
 0x326   :  { %v1292_v0 = vpop.xlane.xlu0 %1291 }
 0x32a   :  { %v1290_v60 = vpop.xlane.xlu0 %1289 }
 0x32d   :  { %v3114_v17 = vpop.xlane.xlu1 %1347 }
 0x32e   :  { %v1296_v22 = vpop.xlane.xlu0 %1295 }
 0x32f   :  { %2100 = vrcp.f32 %v1296_v22 }
 0x330   :  { %2102 = vrcp.f32 %v1262_v20 }
 0x331   :  { %v3116_v12 = vpop.xlane.xlu1 %1345  ;;  %2104 = vrcp.f32 %v1292_v0 }
 0x332   :  { %v1294_v6 = vpop.xlane.xlu0 %1293 }
 0x333   :  { %2106 = vrcp.f32 %v1294_v6  ;;  %v1440_v6 = vmul.f32 %v2099_v56, %v2862_v50 }
 0x334   :  { %2108 = vrcp.f32 %v1260_v36 }
 0x335   :  { %v3118_v13 = vpop.xlane.xlu1 %1351  ;;  %2110 = vrcp.f32 %v1290_v60 }
 0x336   :  { %v1248_v40 = vpop.xlane.xlu0 %1247  ;;  %2112 = vrcp.f32 %v1258_v4 }
 0x337   :  { %2114 = vrcp.f32 %v1288_v48 }
 0x338   :  { %2116 = vrcp.f32 %v1256_v7 }
 0x339   :  { %v3120_v29 = vpop.xlane.xlu1 %1349  ;;  %2118 = vrcp.f32 %v1286_v5 }
 0x33a   :  { %v1278_v19 = vpop.xlane.xlu0 %1277  ;;  %2120 = vrcp.f32 %v3072_v62  ;;  %v3368_v62 = vld [vmem:[#allocation34_spill] sm:$0xff] }
 0x33b   :  { %2122 = vrcp.f32 %v1254_v18 }
 0x33c   :  { %v2101_v24 = vpop.eup %2100  ;;  %2124 = vrcp.f32 %v1284_v25 }
 0x33d   :  { %v1356_v15 = vpop.xlane.xlu1 %1355  ;;  %v1456_v22 = vmul.f32 %v2101_v24, %v2925_v41  ;;  %v2103_v20 = vpop.eup %2102  ;;  %2126 = vrcp.f32 %v3078_v43 }
 0x33e   :  { %v1246_v0 = vpop.xlane.xlu0 %1245  ;;  %v2105_v52 = vpop.eup %2104  ;;  %v1439_v2 = vmul.f32 %v2103_v20, %v2867_v8  ;;  %2128 = vrcp.f32 %v1328_v30 }
 0x33f   :  { %1791 = vmatprep.subr.mxu0 %v1456_v22  ;;  %v1454_v7 = vmul.f32 %v2105_v52, %v2910_v58 }
 0x340   :  { %v2107_v36 = vpop.eup %2106  ;;  %1792 = vmatpush3.xpose.msra.mxu0 %v1440_v6 }
 0x341   :  { %v1354_v60 = vpop.xlane.xlu1 %1353  ;;  %v1455_v4 = vmul.f32 %v2107_v36, %v2934_v45  ;;  %v2109_v41 = vpop.eup %2108 }
 0x342   :  { %v1276_v48 = vpop.xlane.xlu0 %1275  ;;  %v2111_v50 = vpop.eup %2110  ;;  %v1438_v45 = vmul.f32 %v2109_v41, %v3368_v62 }
 0x343   :  { %1793 = vmatprep.subr.mxu0 %v1455_v4  ;;  %v2113_v18 = vpop.eup %2112  ;;  %v1453_v8 = vmul.f32 %v2111_v50, %v2917_v27  ;;  %v3371_v4 = vld [vmem:[#allocation32_spill] sm:$0xff] }
 0x344   :  { %1794 = vmatpush3.xpose.msra.mxu0 %v1439_v2  ;;  %v2115_v24 = vpop.eup %2114  ;;  %v3369_v2 = vld [vmem:[#allocation36_spill] sm:$0xff] }
 0x345   :  { %1795 = vmatprep.subr.mxu0 %v1454_v7  ;;  %v1360_v5 = vpop.xlane.xlu1 %1359  ;;  %v1437_v25 = vmul.f32 %v2113_v18, %v3369_v2  ;;  %v2117_v30 = vpop.eup %2116  ;;  %v1452_v43 = vmul.f32 %v2115_v24, %v2896_v61 }
 0x346   :  { %v1244_v56 = vpop.xlane.xlu0 %1243  ;;  %2130 = vrcp.f32 %v1360_v5  ;;  %v2119_v22 = vpop.eup %2118 }
 0x347   :  { %2132 = vrcp.f32 %v1282_v14  ;;  %v3370_v14 = vld [vmem:[#allocation30_spill] sm:$0xff]  ;;  %v1451_v36 = vmul.f32 %v2119_v22, %v2902_v9 }
 0x348   :  { %2134 = vrcp.f32 %v1326_v44  ;;  %1796 = vmatpush3.xpose.msra.mxu0 %v1438_v45  ;;  %v1436_v20 = vmul.f32 %v2117_v30, %v3370_v14 }
 0x349   :  { %2136 = vrcp.f32 %v1356_v15  ;;  %1797 = vmatprep.subr.mxu0 %v1453_v8  ;;  %v1358_v58 = vpop.xlane.xlu1 %1357  ;;  %v2121_v15 = vpop.eup %2120 }
 0x34a   :  { %v1274_v52 = vpop.xlane.xlu0 %1273  ;;  %2138 = vrcp.f32 %v1358_v58  ;;  %v2123_v6 = vpop.eup %2122  ;;  %v3373_v58 = vld [vmem:[#allocation28_spill] sm:$0xff] }
 0x34b   :  { %2140 = vrcp.f32 %v3100_v63  ;;  %v2125_v63 = vpop.eup %2124  ;;  %v1435_v41 = vmul.f32 %v2123_v6, %v3371_v4  ;;  %v3374_v4 = vld [vmem:[#allocation43_spill] sm:$0xff] }
 0x34c   :  { %2142 = vrcp.f32 %v3102_v51  ;;  %1798 = vmatpush3.xpose.msra.mxu0 %v1437_v25  ;;  %v2127_v61 = vpop.eup %2126 }
 0x34d   :  { %2144 = vrcp.f32 %v1248_v40  ;;  %1799 = vmatprep.subr.mxu0 %v1452_v43  ;;  %v3135_v27 = vpop.xlane.xlu1 %1311  ;;  %v2129_v51 = vpop.eup %2128 }
 0x34e   :  { %2146 = vrcp.f32 %v1354_v60  ;;  %v1242_v44 = vpop.xlane.xlu0 %1241 }
 0x34f   :  { %2148 = vrcp.f32 %v1278_v19  ;;  %v1450_v19 = vmul.f32 %v2125_v63, %v2885_v34 }
 0x350   :  { %2150 = vrcp.f32 %v3110_v42  ;;  %1800 = vmatpush3.xpose.msra.mxu0 %v1436_v20 }
 0x351   :  { %2152 = vrcp.f32 %v3118_v13  ;;  %1801 = vmatprep.subr.mxu0 %v1451_v36  ;;  %v3141_v40 = vpop.xlane.xlu1 %1341 }
 0x352   :  { %2154 = vrcp.f32 %v1246_v0  ;;  %v1272_v60 = vpop.xlane.xlu0 %1271  ;;  %v1472_v0 = vmul.f32 %v2129_v51, %v2870_v32 }
 0x353   :  { %v2131_v7 = vpop.eup %2130  ;;  %2156 = vrcp.f32 %v1276_v48  ;;  %v3372_v48 = vld [vmem:[#allocation26_spill] sm:$0xff] }
 0x354   :  { %v2133_v9 = vpop.eup %2132  ;;  %2158 = vrcp.f32 %v3096_v57  ;;  %1802 = vmatpush3.xpose.msra.mxu0 %v1435_v41  ;;  %v1488_v42 = vmul.f32 %v2131_v7, %v2980_v3  ;;  %v1434_v34 = vmul.f32 %v2121_v15, %v3372_v48 }
 0x355   :  { %v2135_v50 = vpop.eup %2134  ;;  %2160 = vrcp.f32 %v3120_v29  ;;  %1803 = vmatprep.subr.mxu0 %v1450_v19  ;;  %v3148_v13 = vpop.xlane.xlu1 %1309  ;;  %v1449_v57 = vmul.f32 %v2133_v9, %v2891_v1  ;;  %v1433_v1 = vmul.f32 %v2127_v61, %v3373_v58  ;;  %v3376_v19 = vld [vmem:[#allocation45_spill] sm:$0xff] }
 0x356   :  { %v2137_v5 = vpop.eup %2136  ;;  %2162 = vrcp.f32 %v1244_v56  ;;  %v1240_v62 = vpop.xlane.xlu0 %1239  ;;  %1825 = vmatprep.subr.mxu1 %v1488_v42  ;;  %v1471_v56 = vmul.f32 %v2135_v50, %v2879_v33 }
 0x357   :  { %v2139_v45 = vpop.eup %2138  ;;  %2164 = vrcp.f32 %v1274_v52  ;;  %1826 = vmatpush3.xpose.msra.mxu1 %v1472_v0  ;;  %v1486_v52 = vmul.f32 %v2137_v5, %v2960_v55 }
 0x358   :  { %v2141_v3 = vpop.eup %2140  ;;  %2166 = vrcp.f32 %v3098_v39  ;;  %1804 = vmatpush3.xpose.msra.mxu0 %v1434_v34  ;;  %v1487_v29 = vmul.f32 %v2139_v45, %v2990_v54 }
 0x359   :  { %v2143_v18 = vpop.eup %2142  ;;  %2168 = vrcp.f32 %v3114_v17  ;;  %1805 = vmatprep.subr.mxu0 %v1449_v57  ;;  %v3156_v32 = vpop.xlane.xlu1 %1339  ;;  %v1448_v54 = vmul.f32 %v2141_v3, %v2876_v10  ;;  %v3379_v57 = vld [vmem:[#allocation15_spill] sm:$0xff] }
 0x35a   :  { %v2145_v8 = vpop.eup %2144  ;;  %2170 = vrcp.f32 %v1242_v44  ;;  %v1270_v24 = vpop.xlane.xlu0 %1269  ;;  %1827 = vmatprep.subr.mxu1 %v1487_v29  ;;  %v1470_v25 = vmul.f32 %v2143_v18, %v2850_v38  ;;  %v3380_v29 = vld [vmem:[#allocation46_spill] sm:$0xff] }
 0x35b   :  { %v2147_v39 = vpop.eup %2146  ;;  %2172 = vrcp.f32 %v1272_v60  ;;  %1828 = vmatpush3.xpose.msra.mxu1 %v1471_v56  ;;  %v1432_v43 = vmul.f32 %v2145_v8, %v2943_v37  ;;  %v3381_v56 = vld [vmem:[#allocation25_spill] sm:$0xff] }
 0x35c   :  { %v2149_v2 = vpop.eup %2148  ;;  %2174 = vrcp.f32 %v3092_v31  ;;  %1806 = vmatpush3.xpose.msra.mxu0 %v1433_v1  ;;  %1829 = vmatprep.subr.mxu1 %v1486_v52  ;;  %v1485_v10 = vmul.f32 %v2147_v39, %v2970_v21  ;;  %v3382_v1 = vld [vmem:[#allocation42_spill] sm:$0xff] }
 0x35d   :  { %v2151_v17 = vpop.eup %2150  ;;  %2176 = vrcp.f32 %v3116_v12  ;;  %1807 = vmatprep.subr.mxu0 %v1448_v54  ;;  %v3164_v33 = vpop.xlane.xlu1 %1307  ;;  %v1447_v31 = vmul.f32 %v2149_v2, %v2954_v23  ;;  %v3383_v54 = vld [vmem:[#allocation40_spill] sm:$0xff] }
 0x35e   :  { %v2153_v30 = vpop.eup %2152  ;;  %2178 = vrcp.f32 %v1240_v62  ;;  %v1238_v55 = vpop.xlane.xlu0 %1237  ;;  %v1469_v44 = vmul.f32 %v2151_v17, %v2856_v11  ;;  %v3378_v62 = vld [vmem:[#allocation41_spill] sm:$0xff]  ;;  %v3384_v17 = vld [vmem:[#allocation44_spill] sm:$0xff] }
 0x35f   :  { %v2155_v22 = vpop.eup %2154  ;;  %2180 = vrcp.f32 %v1270_v24  ;;  %1830 = vmatpush3.xpose.msra.mxu1 %v1470_v25  ;;  %v1484_v20 = vmul.f32 %v2153_v30, %v2939_v28  ;;  %v3385_v30 = vld [vmem:[#allocation19_spill] sm:$0xff] }
 0x360   :  { %v2157_v15 = vpop.eup %2156  ;;  %2182 = vrcp.f32 %v3094_v35  ;;  %1808 = vmatpush3.xpose.msra.mxu0 %v1432_v43  ;;  %1831 = vmatprep.subr.mxu1 %v1485_v10  ;;  %v1431_v14 = vmul.f32 %v2155_v22, %v2964_v16  ;;  %v3386_v22 = vld [vmem:[#allocation21_spill] sm:$0xff] }
 0x361   :  { %v2159_v12 = vpop.eup %2158  ;;  %2184 = vrcp.f32 %v3112_v26  ;;  %1809 = vmatprep.subr.mxu0 %v1447_v31  ;;  %v1338_v38 = vpop.xlane.xlu1 %1337  ;;  %v1446_v35 = vmul.f32 %v2157_v15, %v2974_v59  ;;  %v3387_v15 = vld [vmem:[#allocation12_spill] sm:$0xff] }
 0x362   :  { %v2161_v37 = vpop.eup %2160  ;;  %2186 = vrcp.f32 %v1238_v55  ;;  %v1268_v21 = vpop.xlane.xlu0 %1267  ;;  %v1468_v36 = vmul.f32 %v2159_v12, %v2840_v47 }
 0x363   :  { %v2163_v23 = vpop.eup %2162  ;;  %2188 = vrcp.f32 %v1268_v21  ;;  %1832 = vmatpush3.xpose.msra.mxu1 %v1469_v44  ;;  %v1483_v61 = vmul.f32 %v2161_v37, %v2950_v46  ;;  %v3375_v46 = vld [vmem:[#allocation24_spill] sm:$0xff]  ;;  %v3388_v44 = vld [vmem:[#allocation39_spill] sm:$0xff] }
 0x364   :  { %v2165_v6 = vpop.eup %2164  ;;  %1810 = vmatpush3.xpose.msra.mxu0 %v1431_v14  ;;  %1833 = vmatprep.subr.mxu1 %v1484_v20  ;;  %2190 = vrcp.f32 %v3135_v27  ;;  %v1430_v28 = vmul.f32 %v2163_v23, %v2984_v53  ;;  %v3389_v23 = vld [vmem:[#allocation14_spill] sm:$0xff] }
 0x365   :  { %v2167_v26 = vpop.eup %2166  ;;  %1811 = vmatprep.subr.mxu0 %v1446_v35  ;;  %v1306_v11 = vpop.xlane.xlu1 %1305  ;;  %2192 = vrcp.f32 %v3141_v40  ;;  %v1445_v59 = vmul.f32 %v2165_v6, %v2993_v49  ;;  %v3377_v49 = vld [vmem:[#allocation13_spill] sm:$0xff]  ;;  %v3390_v6 = vld [vmem:[#allocation38_spill] sm:$0xff] }
 0x366   :  { %v2169_v63 = vpop.eup %2168  ;;  %v1236_v16 = vpop.xlane.xlu0 %1235  ;;  %v1467_v40 = vmul.f32 %v2167_v26, %v3374_v4  ;;  %v3394_v4 = vld [vmem:[#allocation16_spill] sm:$0xff] }
 0x367   :  { %v2171_v51 = vpop.eup %2170  ;;  %2194 = vrcp.f32 %v1236_v16  ;;  %1834 = vmatpush3.xpose.msra.mxu1 %v1468_v36  ;;  %v1482_v9 = vmul.f32 %v2169_v63, %v3376_v19  ;;  %v3391_v36 = vld [vmem:[#allocation17_spill] sm:$0xff] }
 0x368   :  { %v2173_v60 = vpop.eup %2172  ;;  %1812 = vmatpush3.xpose.msra.mxu0 %v1430_v28  ;;  %1835 = vmatprep.subr.mxu1 %v1483_v61  ;;  %2196 = vrcp.f32 %v3148_v13  ;;  %v1429_v7 = vmul.f32 %v2171_v51, %v3375_v46  ;;  %v3392_v51 = vld [vmem:[#allocation23_spill] sm:$0xff]  ;;  %v3395_v46 = vld [vmem:[#allocation20_spill] sm:$0xff] }
 0x369   :  { %v2175_v27 = vpop.eup %2174  ;;  %1813 = vmatprep.subr.mxu0 %v1445_v59  ;;  %v1336_v47 = vpop.xlane.xlu1 %1335  ;;  %2198 = vrcp.f32 %v3156_v32  ;;  %v1444_v50 = vmul.f32 %v2173_v60, %v3377_v49  ;;  %v3393_v60 = vld [vmem:[#allocation18_spill] sm:$0xff]  ;;  %v3397_v49 = vld [vmem:[#allocation48_spill] sm:$0xff] }
 0x36a   :  { %v2177_v41 = vpop.eup %2176  ;;  %v1266_v53 = vpop.xlane.xlu0 %1265  ;;  %v1466_v48 = vmul.f32 %v2175_v27, %v3378_v62 }
 0x36b   :  { %v2179_v42 = vpop.eup %2178  ;;  %2200 = vrcp.f32 %v1266_v53  ;;  %1836 = vmatpush3.xpose.msra.mxu1 %v1467_v40  ;;  %v1481_v18 = vmul.f32 %v2177_v41, %v3380_v29  ;;  %v3401_v29 = vld [vmem:[#allocation31_spill] sm:$0xff] }
 0x36c   :  { %v2181_v0 = vpop.eup %2180  ;;  %1814 = vmatpush3.xpose.msra.mxu0 %v1429_v7  ;;  %1837 = vmatprep.subr.mxu1 %v1482_v9  ;;  %2202 = vrcp.f32 %v3164_v33  ;;  %v1428_v3 = vmul.f32 %v2179_v42, %v3379_v57  ;;  %v3396_v9 = vld [vmem:[#allocation37_spill] sm:$0xff] }
 0x36d   :  { %v2183_v13 = vpop.eup %2182  ;;  %1815 = vmatprep.subr.mxu0 %v1444_v50  ;;  %v1304_v5 = vpop.xlane.xlu1 %1303  ;;  %2204 = vrcp.f32 %v1338_v38  ;;  %v1443_v8 = vmul.f32 %v2181_v0, %v3381_v56  ;;  %v3400_v57 = vld [vmem:[#allocation29_spill] sm:$0xff] }
 0x36e   :  { %v2185_v34 = vpop.eup %2184  ;;  %v1234_v45 = vpop.xlane.xlu0 %1233  ;;  %v1465_v52 = vmul.f32 %v2183_v13, %v3382_v1  ;;  %v3398_v13 = vld [vmem:[#allocation22_spill] sm:$0xff]  ;;  %v3402_v56 = vld [vmem:[#allocation33_spill] sm:$0xff] }
 0x36f   :  { %v2187_v32 = vpop.eup %2186  ;;  %2206 = vrcp.f32 %v1234_v45  ;;  %1838 = vmatpush3.xpose.msra.mxu1 %v1466_v48  ;;  %v1480_v33 = vmul.f32 %v2185_v34, %v3384_v17  ;;  %v3399_v48 = vld [vmem:[#allocation27_spill] sm:$0xff] }
 0x370   :  { %v2189_v24 = vpop.eup %2188  ;;  %1816 = vmatpush3.xpose.msra.mxu0 %v1428_v3  ;;  %1839 = vmatprep.subr.mxu1 %v1481_v18  ;;  %2208 = vrcp.f32 %v1306_v11  ;;  %v1427_v2 = vmul.f32 %v2187_v32, %v3383_v54 }
 0x371   :  { %1817 = vmatprep.subr.mxu0 %v1443_v8  ;;  %v1334_v58 = vpop.xlane.xlu1 %1333  ;;  %v2191_v39 = vpop.eup %2190  ;;  %2210 = vrcp.f32 %v1336_v47  ;;  %v1442_v55 = vmul.f32 %v2189_v24, %v3385_v30 }
 0x372   :  { %v2193_v25 = vpop.eup %2192  ;;  %2212 = vrcp.f32 %v1304_v5  ;;  %v1464_v12 = vmul.f32 %v2191_v39, %v3387_v15  ;;  %v3404_v39 = vld [vmem:[#allocation47_spill] sm:$0xff] }
 0x373   :  { %1840 = vmatpush3.xpose.msra.mxu1 %v1465_v52  ;;  %2214 = vrcp.f32 %v1334_v58  ;;  %v1479_v37 = vmul.f32 %v2193_v25, %v3388_v44  ;;  %v3403_v58 = vld [vmem:[#allocation35_spill] sm:$0xff] }
 0x374   :  { %v2195_v43 = vpop.eup %2194  ;;  %1818 = vmatpush3.xpose.msra.mxu0 %v1427_v2  ;;  %1841 = vmatprep.subr.mxu1 %v1480_v33  ;;  %v3405_v2 = vld [vmem:[#allocation49_spill] sm:$0xff] }
 0x375   :  { %1819 = vmatprep.subr.mxu0 %v1442_v55  ;;  %v1302_v10 = vpop.xlane.xlu1 %1301  ;;  %v1426_v31 = vmul.f32 %v2195_v43, %v3386_v22  ;;  %v2197_v38 = vpop.eup %2196 }
 0x376   :  { %v2199_v21 = vpop.eup %2198  ;;  %2216 = vrcp.f32 %v1302_v10  ;;  %v1463_v26 = vmul.f32 %v2197_v38, %v3390_v6 }
 0x377   :  { %1842 = vmatpush3.xpose.msra.mxu1 %v1464_v12  ;;  %v1478_v63 = vmul.f32 %v2199_v21, %v3391_v36 }
 0x378   :  { %v2201_v14 = vpop.eup %2200  ;;  %1820 = vmatpush3.xpose.msra.mxu0 %v1426_v31  ;;  %1843 = vmatprep.subr.mxu1 %v1479_v37 }
 0x379   :  { %v1332_v20 = vpop.xlane.xlu1 %1331  ;;  %v1441_v35 = vmul.f32 %v2201_v14, %v3389_v23  ;;  %v2203_v11 = vpop.eup %2202 }
 0x37a   :  { %2218 = vrcp.f32 %v1332_v20  ;;  %v2205_v16 = vpop.eup %2204  ;;  %v1462_v27 = vmul.f32 %v2203_v11, %v3393_v60 }
 0x37b   :  { %1821 = vmatprep.subr.mxu0 %v1441_v35  ;;  %1844 = vmatpush3.xpose.msra.mxu1 %v1463_v26  ;;  %v1477_v40 = vmul.f32 %v2205_v16, %v3394_v4 }
 0x37c   :  { %v2207_v28 = vpop.eup %2206  ;;  %1845 = vmatprep.subr.mxu1 %v1478_v63 }
 0x37d   :  { %v1300_v61 = vpop.xlane.xlu1 %1299  ;;  %v1425_v59 = vmul.f32 %v2207_v28, %v3392_v51  ;;  %v2209_v47 = vpop.eup %2208 }
 0x37e   :  { %2220 = vrcp.f32 %v1300_v61  ;;  %v2211_v41 = vpop.eup %2210  ;;  %v1461_v7 = vmul.f32 %v2209_v47, %v3395_v46 }
 0x37f   :  { %1822 = vmatpush3.xpose.msra.mxu0 %v1425_v59  ;;  %1846 = vmatpush3.xpose.msra.mxu1 %v1462_v27  ;;  %v2213_v19 = vpop.eup %2212  ;;  %v1476_v42 = vmul.f32 %v2211_v41, %v3396_v9 }
 0x380   :  { %1847 = vmatprep.subr.mxu1 %v1477_v40  ;;  %v2215_v50 = vpop.eup %2214  ;;  %v1460_v5 = vmul.f32 %v2213_v19, %v3398_v13 }
 0x381   :  { %v1330_v53 = vpop.xlane.xlu1 %1329  ;;  %v1475_v34 = vmul.f32 %v2215_v50, %v3399_v48 }
 0x382   :  { %2222 = vrcp.f32 %v1330_v53  ;;  %1824 = vmatmul.mubr.f32.vlgmr.msra.gmra.mxu0 %v3397_v49 }
 0x383   :  { %1848 = vmatpush3.xpose.msra.mxu1 %v1461_v7  ;;  %v2217_v62 = vpop.eup %2216 }
 0x384   :  { %1849 = vmatprep.subr.mxu1 %v1476_v42  ;;  %v1459_v3 = vmul.f32 %v2217_v62, %v3400_v57 }
 0x385   :  { %v1298_v0 = vpop.xlane.xlu1 %1297 }
 0x386   :  { %2224 = vrcp.f32 %v1298_v0 }
 0x387   :  { %v2219_v45 = vpop.eup %2218  ;;  %1850 = vmatpush3.xpose.msra.mxu1 %v1460_v5 }
 0x388   :  { %1851 = vmatprep.subr.mxu1 %v1475_v34  ;;  %v1474_v18 = vmul.f32 %v2219_v45, %v3401_v29 }
 0x38b   :  { %v2221_v32 = vpop.eup %2220  ;;  %1852 = vmatpush3.xpose.msra.mxu1 %v1459_v3 }
 0x38c   :  { %1853 = vmatprep.subr.mxu1 %v1474_v18  ;;  %v1458_v8 = vmul.f32 %v2221_v32, %v3402_v56 }
 0x38f   :  { %v2223_v24 = vpop.eup %2222  ;;  %1854 = vmatpush3.xpose.msra.mxu1 %v1458_v8 }
 0x390   :  { %v1473_v1 = vmul.f32 %v2223_v24, %v3403_v58 }
 0x392   :  { %1855 = vmatprep.subr.mxu1 %v1473_v1 }
 0x393   :  { %v2225_v52 = vpop.eup %2224 }
 0x394   :  { %v1457_v54 = vmul.f32 %v2225_v52, %v3404_v39 }
 0x396   :  { %1856 = vmatpush3.xpose.msra.mxu1 %v1457_v54 }
 0x399   :  { %1858 = vmatmul.mubr.f32.vlgmr.msra.gmra.mxu1 %v3405_v2 }
 0x442   :  { %v1555_v17 = vpop.f32.mrf.mxu0 }
 0x444   :  { %v1557_v33 = vpop.f32.mrf.mxu0 }
 0x445   :  { %v1635_v25 = vcombine.low %v1555_v17, %v1557_v33 }
 0x447   :  { %1639 = vst [vmem:[#allocation8] sm:$0xff] %v1635_v25 }
 0x459   :  { %v1626_v30 = vpop.f32.mrf.mxu1 }
 0x45b   :  { %v1628_v55 = vpop.f32.mrf.mxu1 }
 0x45c   :  { %v1636_v43 = vcombine.low %v1626_v30, %v1628_v55 }
 0x45e   :  { %1640 = vst [vmem:[#allocation8 + $0x8] sm:$0xff] %v1636_v43 }
 0x45f   :  { %2297 = shalt.err (!%p2294_p5)
}
 0x460   :  { %1652 = dma.vmem_to_hbm [thread:$0]  %s1647_s2, 256, %s3226_s3, [#allocation4], %s2316_s22, %s2316_s22, %s2317_s23  }
 0x461   :  { %2310 = dma.done.wait [#allocation4], 256  }
 0x462   :  { %2311 = vsyncadd [#allocation4], 4294967040 }
 0x463   :  { %1656 = vsyncpa [#allocation3], 1 }
 0x464   :  { %1657 = vsyncpa [#allocation6], 1 }
 0x465   :  { %1658 = vsyncpa [#allocation4], 1 }

</bundles_post_ra>
